<compile_context>
chip_gen: v6e
topology: v6e:2x2x1
jax: 0.10.0
libtpu: 0.0.40
codegen_flags: <defaults>
</compile_context>

<pallas_src>
import jax
import jax.numpy as jnp
from jax import lax
from jax.experimental import pallas as pl
from jax.experimental.pallas import tpu as pltpu

# ----- small config (module defaults: vocab=50265, embed=hidden=1024, layers=4) -----
VOCAB_SIZE   = 64
EMBED_SIZE   = 128
HIDDEN_SIZE  = 128     # lane-aligned (multiple of 128); embed == hidden as in the module
NUM_LAYERS   = 2
PAD_TOKEN_ID = 1
TAGGER_VOCAB = 16      # source_tagger.vocab_size
NUM_TAGS     = 8       # source_tagger.num_tags
TAG_HID      = 16      # internal width of the synthetic source tagger
TAG_PAD_IDX  = 0       # source_tagger.embedding.padding_idx
SEQ_LEN      = 16
BATCH        = 4


# ------------------------------- Pallas LSTM kernel ---------------------------------
def _lstm_kernel(embed_hbm, mask_ref, wih_ref, whh_ref, b_ref,
                 out_ref, h_ref, c_ref, gx_ref, copy_sem):
    """grid = (batch_block, layer).  out_ref is the resident working buffer for the
    current batch block: it holds the layer's input on entry and its output on exit."""
    bblk  = pl.program_id(0)          # batch block  (outer, "parallel")
    layer = pl.program_id(1)          # LSTM layer   (inner, "arbitrary")
    S, BB, H = out_ref.shape
    G = 4 * H

    # Layer 0: DMA this batch block's embeddings from HBM straight into the resident
    # working/output buffer (no separate VMEM embed block, no full-tensor copy).
    @pl.when(layer == 0)
    def _():
        cp = pltpu.make_async_copy(embed_hbm.at[bblk], out_ref, copy_sem)
        cp.start()
        cp.wait()

    wih  = wih_ref[0]                 # (H, 4H) bf16
    whh  = whh_ref[0]                 # (H, 4H) bf16
    bias = b_ref[0]                   # (1, 4H) f32

    CH = 8 if S % 8 == 0 else S       # time-chunk used to pipeline proj vs. recurrence
    n_chunks = S // CH

    def project(c_idx):
        # gates_x[t] = x[t] @ W_ih^T + (b_ih + b_hh) for one chunk of timesteps.
        start = c_idx * CH
        if not isinstance(start, int):
            start = pl.multiple_of(start, CH)
        x = out_ref[pl.ds(start, CH)]                              # (CH, BB, H) f32
        xb = x.reshape(CH * BB, H).astype(jnp.bfloat16)
        g = jnp.dot(xb, wih, preferred_element_type=jnp.float32) + bias
        gx_ref[pl.ds(start, CH)] = g.reshape(CH, BB, G).astype(jnp.bfloat16)

    project(0)                        # prologue: chunk 0

    def step(t, carry):
        h, c = carry
        gates = gx_ref[t].astype(jnp.float32) + jnp.dot(
            h.astype(jnp.bfloat16), whh, preferred_element_type=jnp.float32)   # (BB,4H)
        if H % 128 == 0:
            # lane-aligned slices: transcendentals only on the gates that need them
            sig_if = jax.nn.sigmoid(gates[:, 0:2 * H])
            i_g = sig_if[:, 0:H]
            f_g = sig_if[:, H:2 * H]
            g_g = jnp.tanh(gates[:, 2 * H:3 * H])
            o_g = jax.nn.sigmoid(gates[:, 3 * H:4 * H])
        else:
            # H < 128: full-width activations on whole vregs, slice afterwards
            sig = jax.nn.sigmoid(gates)
            tah = jnp.tanh(gates)
            i_g = sig[:, 0:H]
            f_g = sig[:, H:2 * H]
            g_g = tah[:, 2 * H:3 * H]
            o_g = sig[:, 3 * H:4 * H]
        c_new = f_g * c + i_g * g_g
        h_new = o_g * jnp.tanh(c_new)

        m = mask_ref[t]                                   # (BB, 1) 1.0 valid / 0.0 pad
        out_ref[t] = m * h_new                            # padded positions -> zeros
        h_nxt = h + m * (h_new - h)                       # padded steps: state frozen
        c_nxt = c + m * (c_new - c)
        return (h_nxt, c_nxt)

    def chunk_body(ci, carry):
        if n_chunks > 1:
            # issue the (independent) projection for the next chunk so its MXU work
            # overlaps with this chunk's serial recurrence
            @pl.when(ci + 1 < n_chunks)
            def _():
                project(ci + 1)
        base = ci * CH
        # bounded unroll: only the CH-step chunk is unrolled
        return lax.fori_loop(0, CH, lambda i, hc: step(base + i, hc), carry,
                             unroll=True)

    h0 = jnp.zeros((BB, H), jnp.float32)
    c0 = jnp.zeros((BB, H), jnp.float32)
    h_fin, c_fin = lax.fori_loop(0, n_chunks, chunk_body, (h0, c0))
    h_ref[0] = h_fin                                      # state at last *valid* timestep
    c_ref[0] = c_fin


def _vmem_limit_bytes(S, BB, H):
    """Computed VMEM budget with headroom, capped so it also fits v7x's 64 MiB core."""
    G = 4 * H
    est = (S * BB * H * 4          # resident out/working block (f32)
           + S * BB * G * 2        # gx scratch (bf16)
           + 2 * 2 * H * G * 2     # W_ih + W_hh, double-buffered, bf16
           + 2 * 1 * G * 4         # bias, double-buffered
           + 2 * S * BB * 4        # mask, double-buffered
           + 2 * 2 * BB * H * 4)   # h/c output blocks, double-buffered
    est = int(est * 1.5) + (2 << 20)            # headroom for Mosaic internal scratch
    return max(16 << 20, min(est, 56 << 20))


def run_lstm_pallas(embed, mask, wih_t, whh_t, bias):
    S, Bp, H = embed.shape
    L = wih_t.shape[0]
    G = 4 * H
    assert Bp % 8 == 0

    # Batch-block grid axis: lets v7x shard independent sequences across its 2
    # TensorCores ("parallel"); a single block when the padded batch is small.
    NB = 2 if (Bp >= 16 and Bp % 16 == 0) else 1
    BB = Bp // NB
    # (NB, S, BB, H) view so the per-block embed DMA slices a leading dim of the HBM ref.
    embed_blk = embed.reshape(S, NB, BB, H).transpose(1, 0, 2, 3)

    grid_spec = pltpu.PrefetchScalarGridSpec(
        num_scalar_prefetch=0,
        grid=(NB, L),                                       # stream one layer at a time
        in_specs=[
            pl.BlockSpec(memory_space=pl.ANY),              # embed: stays in HBM, DMA at l==0
            pl.BlockSpec((S, BB, 1), lambda b, l: (0, b, 0)),   # valid mask (resident per block)
            pl.BlockSpec((1, H, G), lambda b, l: (l, 0, 0)),    # W_ih^T bf16, streamed per layer
            pl.BlockSpec((1, H, G), lambda b, l: (l, 0, 0)),    # W_hh^T bf16, streamed per layer
            pl.BlockSpec((1, 1, G), lambda b, l: (l, 0, 0)),    # bias f32,   streamed per layer
        ],
        out_specs=[
            pl.BlockSpec((S, BB, H), lambda b, l: (0, b, 0)),   # encoder_output = working buf
            pl.BlockSpec((1, BB, H), lambda b, l: (l, b, 0)),   # h_o per layer
            pl.BlockSpec((1, BB, H), lambda b, l: (l, b, 0)),   # c_o per layer
        ],
        scratch_shapes=[
            pltpu.VMEM((S, BB, G), jnp.bfloat16),           # hoisted x->gates buffer (bf16)
            pltpu.SemaphoreType.DMA(()),                    # embed DMA semaphore
        ],
    )
    out_shapes = (
        jax.ShapeDtypeStruct((S, Bp, H), jnp.float32),      # encoder_output
        jax.ShapeDtypeStruct((L, Bp, H), jnp.float32),      # h_o
        jax.ShapeDtypeStruct((L, Bp, H), jnp.float32),      # c_o
    )
    return pl.pallas_call(
        _lstm_kernel,
        grid_spec=grid_spec,
        out_shape=out_shapes,
        compiler_params=pltpu.CompilerParams(
            dimension_semantics=("parallel", "arbitrary"),  # batch blocks indep., layers serial
            vmem_limit_bytes=_vmem_limit_bytes(S, BB, H),
        ),
    )(embed_blk, mask, wih_t, whh_t, bias)


# ------------------------------- parameters (synthetic) -----------------------------
def init_params(key):
    ks = jax.random.split(key, 10)
    s = 0.1
    embedding = jax.random.normal(ks[0], (VOCAB_SIZE, EMBED_SIZE), jnp.float32) * s
    embedding_vocab = jax.random.normal(ks[1], (VOCAB_SIZE, 1), jnp.float32) * s
    embedding_vocab = embedding_vocab.at[PAD_TOKEN_ID].set(0.0)          # padding_idx
    embedding_tag = jax.random.normal(ks[2], (NUM_TAGS, EMBED_SIZE), jnp.float32) * s
    embedding_tag = embedding_tag.at[TAG_PAD_IDX].set(0.0)               # pad_tag_idx
    # synthetic source_tagger (the real one is an external module): embed -> linear
    tagger_embed = jax.random.normal(ks[3], (TAGGER_VOCAB, TAG_HID), jnp.float32) * s
    tagger_w = jax.random.normal(ks[4], (TAG_HID, NUM_TAGS), jnp.float32) * s
    tagger_b = jax.random.normal(ks[5], (NUM_TAGS,), jnp.float32) * s
    # LSTM weights, PyTorch layout W_ih:(4H,in), W_hh:(4H,H); pre-transposed + bf16 cast
    H = HIDDEN_SIZE
    wih  = jax.random.normal(ks[6], (NUM_LAYERS, 4 * H, H), jnp.float32) * s
    whh  = jax.random.normal(ks[7], (NUM_LAYERS, 4 * H, H), jnp.float32) * s
    b_ih = jax.random.normal(ks[8], (NUM_LAYERS, 4 * H), jnp.float32) * s
    b_hh = jax.random.normal(ks[9], (NUM_LAYERS, 4 * H), jnp.float32) * s
    return dict(
        embedding=embedding,
        embedding_vocab=embedding_vocab,
        embedding_tag=embedding_tag,
        tagger_embed=tagger_embed,
        tagger_w=tagger_w,
        tagger_b=tagger_b,
        wih_t=jnp.transpose(wih, (0, 2, 1)).astype(jnp.bfloat16),   # (L, H, 4H) bf16
        whh_t=jnp.transpose(whh, (0, 2, 1)).astype(jnp.bfloat16),   # (L, H, 4H) bf16
        bias=(b_ih + b_hh).reshape(NUM_LAYERS, 1, 4 * H),           # f32
    )


# ------------------------------- Encoder.forward ------------------------------------
@jax.jit
def encoder_forward(params, x):
    # x: (max_seq_len, batch) int32 token ids
    S, B = x.shape
    x_vocab1 = params['embedding_vocab'][x, 0]                      # squeeze(-1) -> (S,B)
    xmin = jnp.min(x_vocab1)
    xmax = jnp.max(x_vocab1)
    denom = xmax - xmin
    # guard 0/0 when all tokens map to the same embedding_vocab value
    scale = jnp.where(denom == 0.0, 0.0,
                      (TAGGER_VOCAB - 1) / jnp.where(denom == 0.0, 1.0, denom))
    x_vocab2 = jnp.round(scale * (x_vocab1 - xmin)).astype(x.dtype)  # .round().type_as(x)

    # source_tagger(x_vocab2.T) -> logits (B, S, num_tags); argmax -> tag ids; transpose back
    xt = jnp.transpose(x_vocab2, (1, 0))
    tag_logits = params['tagger_embed'][xt] @ params['tagger_w'] + params['tagger_b']
    tag_idx = jnp.transpose(jnp.argmax(tag_logits, axis=-1), (1, 0))  # (S, B)

    lengths = jnp.sum((x != PAD_TOKEN_ID).astype(jnp.int32), axis=0)  # count_nonzero

    embed = params['embedding'][x] + params['embedding_tag'][tag_idx]  # (S, B, E)
    # TODO(synk): nn.Dropout / inter-layer LSTM dropout are identity here (inference mode)

    # pad batch to a sublane multiple (8) for the kernel; padded seqs have length 0
    Bp = ((B + 7) // 8) * 8
    pad = Bp - B
    embed_p = jnp.pad(embed, ((0, 0), (0, pad), (0, 0)))
    lengths_p = jnp.pad(lengths, ((0, pad),))
    mask = (jnp.arange(S)[:, None, None] < lengths_p[None, :, None]).astype(jnp.float32)

    enc_out, h_o, c_o = run_lstm_pallas(
        embed_p, mask, params['wih_t'], params['whh_t'], params['bias'])
    enc_out = enc_out[:, :B]
    h_o = h_o[:, :B]
    c_o = c_o[:, :B]

    attention_mask = (x == PAD_TOKEN_ID)                              # (S, B) bool
    return enc_out, attention_mask, h_o, c_o


if __name__ == "__main__":
    key = jax.random.PRNGKey(0)
    pkey, xkey = jax.random.split(key)
    params = init_params(pkey)

    # random tokens in [2, VOCAB), right-padded with PAD_TOKEN_ID (one full-length seq)
    x = jax.random.randint(xkey, (SEQ_LEN, BATCH), 2, VOCAB_SIZE, dtype=jnp.int32)
    seq_lengths = jnp.array([SEQ_LEN, 11, 7, 3], dtype=jnp.int32)
    pos = jnp.arange(SEQ_LEN)[:, None]
    x = jnp.where(pos < seq_lengths[None, :], x, PAD_TOKEN_ID)

    enc_out, attn_mask, h_o, c_o = encoder_forward(params, x)
    jax.block_until_ready((enc_out, attn_mask, h_o, c_o))

    assert enc_out.shape == (SEQ_LEN, BATCH, HIDDEN_SIZE)
    assert attn_mask.shape == (SEQ_LEN, BATCH)
    assert h_o.shape == (NUM_LAYERS, BATCH, HIDDEN_SIZE)
    assert c_o.shape == (NUM_LAYERS, BATCH, HIDDEN_SIZE)
    assert bool(jnp.all(jnp.isfinite(enc_out)))
    print("KERNEL_OK")
</pallas_src>

<mosaic_0001>
module attributes {stable_mosaic.version = 11 : i64} {
  func.func @_lstm_kernel(%arg0: i32, %arg1: i32, %arg2: memref<1x16x8x128xf32, #tpu.memory_space<any>>, %arg3: memref<16x8x1xf32, #tpu.memory_space<vmem>>, %arg4: memref<1x128x512xbf16, #tpu.memory_space<vmem>>, %arg5: memref<1x128x512xbf16, #tpu.memory_space<vmem>>, %arg6: memref<1x1x512xf32, #tpu.memory_space<vmem>>, %arg7: memref<16x8x128xf32, #tpu.memory_space<vmem>>, %arg8: memref<1x8x128xf32, #tpu.memory_space<vmem>>, %arg9: memref<1x8x128xf32, #tpu.memory_space<vmem>>, %arg10: memref<16x8x512xbf16, #tpu.memory_space<vmem>>, %arg11: memref<!tpu.dma_semaphore, #tpu.memory_space<semaphore_mem>>) attributes {dimension_semantics = [#tpu.dimension_semantics<parallel>, #tpu.dimension_semantics<arbitrary>], iteration_bounds = array<i64: 1, 2>, scalar_prefetch = 0 : i64, scratch_operands = 2 : i64, tpu.core_type = #tpu.core_type<tc>, window_params = [{}, {transform_indices = @transform_1, window_bounds = array<i64: 16, 8, 1>}, {transform_indices = @transform_2, window_bounds = array<i64: 1, 128, 512>}, {transform_indices = @transform_3, window_bounds = array<i64: 1, 128, 512>}, {transform_indices = @transform_4, window_bounds = array<i64: 1, 1, 512>}, {transform_indices = @transform_5, window_bounds = array<i64: 16, 8, 128>}, {transform_indices = @transform_6, window_bounds = array<i64: 1, 8, 128>}, {transform_indices = @transform_7, window_bounds = array<i64: 1, 8, 128>}]} {
    %c0_i32 = arith.constant 0 : i32
    %0 = arith.cmpi eq, %arg1, %c0_i32 : i32
    %1 = arith.extui %0 : i1 to i32
    %c0_i32_0 = arith.constant 0 : i32
    %2 = arith.cmpi ne, %1, %c0_i32_0 : i32
    scf.if %2 {
      %c0_i32_25 = arith.constant 0 : i32
      %c0_i32_26 = arith.constant 0 : i32
      %c0_i32_27 = arith.constant 0 : i32
      %28 = tpu.memref_slice %arg2[%arg0, %c0_i32_25, %c0_i32_26, %c0_i32_27] : memref<1x16x8x128xf32, #tpu.memory_space<any>> -> memref<1x16x8x128xf32, #tpu.memory_space<any>>
      %29 = tpu.memref_squeeze %28 : memref<1x16x8x128xf32, #tpu.memory_space<any>> -> memref<16x8x128xf32, #tpu.memory_space<any>>
      tpu.enqueue_dma source(%29 : memref<16x8x128xf32, #tpu.memory_space<any>>) target(%arg7 : memref<16x8x128xf32, #tpu.memory_space<vmem>>) target_semaphore(%arg11 : memref<!tpu.dma_semaphore, #tpu.memory_space<semaphore_mem>>)
      %c0_i32_28 = arith.constant 0 : i32
      %c0_i32_29 = arith.constant 0 : i32
      %c0_i32_30 = arith.constant 0 : i32
      %30 = tpu.memref_slice %arg2[%arg0, %c0_i32_28, %c0_i32_29, %c0_i32_30] : memref<1x16x8x128xf32, #tpu.memory_space<any>> -> memref<1x16x8x128xf32, #tpu.memory_space<any>>
      %31 = tpu.memref_squeeze %30 : memref<1x16x8x128xf32, #tpu.memory_space<any>> -> memref<16x8x128xf32, #tpu.memory_space<any>>
      tpu.wait_dma2 semaphore(%arg11 : memref<!tpu.dma_semaphore, #tpu.memory_space<semaphore_mem>>) src(%31 : memref<16x8x128xf32, #tpu.memory_space<any>>) dst(%arg7 : memref<16x8x128xf32, #tpu.memory_space<vmem>>)
    } else {
    }
    %c0 = arith.constant 0 : index
    %c0_1 = arith.constant 0 : index
    %c0_2 = arith.constant 0 : index
    %3 = vector.load %arg4[%c0, %c0_1, %c0_2] : memref<1x128x512xbf16, #tpu.memory_space<vmem>>, vector<1x128x512xbf16>
    %4 = vector.shape_cast %3 : vector<1x128x512xbf16> to vector<128x512xbf16>
    %c0_3 = arith.constant 0 : index
    %c0_4 = arith.constant 0 : index
    %c0_5 = arith.constant 0 : index
    %5 = vector.load %arg5[%c0_3, %c0_4, %c0_5] : memref<1x128x512xbf16, #tpu.memory_space<vmem>>, vector<1x128x512xbf16>
    %6 = vector.shape_cast %5 : vector<1x128x512xbf16> to vector<128x512xbf16>
    %c0_6 = arith.constant 0 : index
    %c0_7 = arith.constant 0 : index
    %c0_8 = arith.constant 0 : index
    %7 = vector.load %arg6[%c0_6, %c0_7, %c0_8] : memref<1x1x512xf32, #tpu.memory_space<vmem>>, vector<1x1x512xf32>
    %8 = vector.shape_cast %7 : vector<1x1x512xf32> to vector<1x512xf32>
    %c0_9 = arith.constant 0 : index
    %c0_10 = arith.constant 0 : index
    %c0_11 = arith.constant 0 : index
    %9 = vector.load %arg7[%c0_9, %c0_10, %c0_11] : memref<16x8x128xf32, #tpu.memory_space<vmem>>, vector<8x8x128xf32>
    %10 = vector.shape_cast %9 : vector<8x8x128xf32> to vector<64x128xf32>
    %11 = arith.truncf %10 : vector<64x128xf32> to vector<64x128xbf16>
    %cst = arith.constant dense<0.000000e+00> : vector<64x512xf32>
    %12 = tpu.matmul %11, %4, %cst {dimension_numbers = #tpu.dot_dimension_numbers<[1], [0], [0], [1], [0, 0, 1, 1], [], []>} : vector<64x128xbf16>, vector<128x512xbf16>, vector<64x512xf32> -> vector<64x512xf32>
    %13 = vector.broadcast %8 : vector<1x512xf32> to vector<64x512xf32>
    %14 = arith.addf %12, %13 : vector<64x512xf32>
    %15 = vector.shape_cast %14 : vector<64x512xf32> to vector<8x8x512xf32>
    %16 = arith.truncf %15 : vector<8x8x512xf32> to vector<8x8x512xbf16>
    %c0_12 = arith.constant 0 : index
    %c0_13 = arith.constant 0 : index
    %c0_14 = arith.constant 0 : index
    %17 = vector.load %arg10[%c0_12, %c0_13, %c0_14] : memref<16x8x512xbf16, #tpu.memory_space<vmem>>, vector<8x8x512xbf16>
    tpu.vector_store %arg10[%c0_12, %c0_13, %c0_14], %16 {strides = array<i32>} : memref<16x8x512xbf16, #tpu.memory_space<vmem>>, vector<8x8x512xbf16>,
    %cst_15 = arith.constant 0.000000e+00 : f32
    %18 = vector.broadcast %cst_15 : f32 to vector<8x128xf32>
    %cst_16 = arith.constant 0.000000e+00 : f32
    %19 = vector.broadcast %cst_16 : f32 to vector<8x128xf32>
    %c0_i32_17 = arith.constant 0 : i32
    %c2_i32 = arith.constant 2 : i32
    %20 = arith.addi %c0_i32_17, %c2_i32 : i32
    %c1_i32 = arith.constant 1 : i32
    %21:2 = scf.for %arg12 = %c0_i32_17 to %20 step %c1_i32 iter_args(%arg13 = %18, %arg14 = %19) -> (vector<8x128xf32>, vector<8x128xf32>)  : i32 {
      %c1_i32_25 = arith.constant 1 : i32
      %28 = arith.addi %arg12, %c1_i32_25 : i32
      %c2_i32_26 = arith.constant 2 : i32
      %29 = arith.cmpi slt, %28, %c2_i32_26 : i32
      %30 = arith.extui %29 : i1 to i32
      %c0_i32_27 = arith.constant 0 : i32
      %31 = arith.cmpi ne, %30, %c0_i32_27 : i32
      scf.if %31 {
        %c1_i32_104 = arith.constant 1 : i32
        %401 = arith.addi %arg12, %c1_i32_104 : i32
        %c8_i32_105 = arith.constant 8 : i32
        %402 = arith.muli %401, %c8_i32_105 : i32
        %403 = tpu.assume_multiple %402, 8 : i32
        %404 = arith.index_cast %403 : i32 to index
        %c0_106 = arith.constant 0 : index
        %c0_107 = arith.constant 0 : index
        %405 = vector.load %arg7[%404, %c0_106, %c0_107] : memref<16x8x128xf32, #tpu.memory_space<vmem>>, vector<8x8x128xf32>
        %406 = vector.shape_cast %405 : vector<8x8x128xf32> to vector<64x128xf32>
        %407 = arith.truncf %406 : vector<64x128xf32> to vector<64x128xbf16>
        %cst_108 = arith.constant dense<0.000000e+00> : vector<64x512xf32>
        %408 = tpu.matmul %407, %4, %cst_108 {dimension_numbers = #tpu.dot_dimension_numbers<[1], [0], [0], [1], [0, 0, 1, 1], [], []>} : vector<64x128xbf16>, vector<128x512xbf16>, vector<64x512xf32> -> vector<64x512xf32>
        %409 = vector.broadcast %8 : vector<1x512xf32> to vector<64x512xf32>
        %410 = arith.addf %408, %409 : vector<64x512xf32>
        %411 = vector.shape_cast %410 : vector<64x512xf32> to vector<8x8x512xf32>
        %412 = arith.truncf %411 : vector<8x8x512xf32> to vector<8x8x512xbf16>
        %413 = arith.index_cast %403 : i32 to index
        %c0_109 = arith.constant 0 : index
        %c0_110 = arith.constant 0 : index
        %414 = vector.load %arg10[%413, %c0_109, %c0_110] : memref<16x8x512xbf16, #tpu.memory_space<vmem>>, vector<8x8x512xbf16>
        tpu.vector_store %arg10[%413, %c0_109, %c0_110], %412 {strides = array<i32>} : memref<16x8x512xbf16, #tpu.memory_space<vmem>>, vector<8x8x512xbf16>,
      } else {
      }
      %c8_i32 = arith.constant 8 : i32
      %32 = arith.muli %arg12, %c8_i32 : i32
      %c0_i32_28 = arith.constant 0 : i32
      %33 = arith.addi %32, %c0_i32_28 : i32
      %34 = arith.index_cast %33 : i32 to index
      %c0_29 = arith.constant 0 : index
      %c0_30 = arith.constant 0 : index
      %35 = vector.load %arg10[%34, %c0_29, %c0_30] : memref<16x8x512xbf16, #tpu.memory_space<vmem>>, vector<1x8x512xbf16>
      %36 = vector.shape_cast %35 : vector<1x8x512xbf16> to vector<8x512xbf16>
      %37 = arith.extf %36 : vector<8x512xbf16> to vector<8x512xf32>
      %38 = arith.truncf %arg13 : vector<8x128xf32> to vector<8x128xbf16>
      %cst_31 = arith.constant dense<0.000000e+00> : vector<8x512xf32>
      %39 = tpu.matmul %38, %6, %cst_31 {dimension_numbers = #tpu.dot_dimension_numbers<[1], [0], [0], [1], [0, 0, 1, 1], [], []>} : vector<8x128xbf16>, vector<128x512xbf16>, vector<8x512xf32> -> vector<8x512xf32>
      %40 = arith.addf %37, %39 : vector<8x512xf32>
      %41 = vector.extract_strided_slice %40 {offsets = [0, 0], sizes = [8, 256], strides = [1, 1]} : vector<8x512xf32> to vector<8x256xf32>
      %42 = arith.negf %41 : vector<8x256xf32>
      %43 = math.exp %42 : vector<8x256xf32>
      %cst_32 = arith.constant 1.000000e+00 : f32
      %44 = vector.broadcast %cst_32 : f32 to vector<8x256xf32>
      %45 = arith.addf %44, %43 : vector<8x256xf32>
      %46 = arith.divf %44, %45 : vector<8x256xf32>
      %47 = vector.extract_strided_slice %46 {offsets = [0, 0], sizes = [8, 128], strides = [1, 1]} : vector<8x256xf32> to vector<8x128xf32>
      %48 = vector.extract_strided_slice %46 {offsets = [0, 128], sizes = [8, 128], strides = [1, 1]} : vector<8x256xf32> to vector<8x128xf32>
      %49 = vector.extract_strided_slice %40 {offsets = [0, 256], sizes = [8, 128], strides = [1, 1]} : vector<8x512xf32> to vector<8x128xf32>
      %50 = math.tanh %49 : vector<8x128xf32>
      %51 = vector.extract_strided_slice %40 {offsets = [0, 384], sizes = [8, 128], strides = [1, 1]} : vector<8x512xf32> to vector<8x128xf32>
      %52 = arith.negf %51 : vector<8x128xf32>
      %53 = math.exp %52 : vector<8x128xf32>
      %cst_33 = arith.constant 1.000000e+00 : f32
      %54 = vector.broadcast %cst_33 : f32 to vector<8x128xf32>
      %55 = arith.addf %54, %53 : vector<8x128xf32>
      %56 = arith.divf %54, %55 : vector<8x128xf32>
      %57 = arith.mulf %48, %arg14 : vector<8x128xf32>
      %58 = arith.mulf %47, %50 : vector<8x128xf32>
      %59 = arith.addf %57, %58 : vector<8x128xf32>
      %60 = math.tanh %59 : vector<8x128xf32>
      %61 = arith.mulf %56, %60 : vector<8x128xf32>
      %62 = arith.index_cast %33 : i32 to index
      %c0_34 = arith.constant 0 : index
      %c0_35 = arith.constant 0 : index
      %63 = vector.load %arg3[%62, %c0_34, %c0_35] : memref<16x8x1xf32, #tpu.memory_space<vmem>>, vector<1x8x1xf32>
      %64 = vector.shape_cast %63 : vector<1x8x1xf32> to vector<8x1xf32>
      %65 = vector.broadcast %64 : vector<8x1xf32> to vector<8x128xf32>
      %66 = arith.mulf %65, %61 : vector<8x128xf32>
      %67 = arith.index_cast %33 : i32 to index
      %c0_36 = arith.constant 0 : index
      %c0_37 = arith.constant 0 : index
      %68 = vector.load %arg7[%67, %c0_36, %c0_37] : memref<16x8x128xf32, #tpu.memory_space<vmem>>, vector<1x8x128xf32>
      %69 = vector.shape_cast %68 : vector<1x8x128xf32> to vector<8x128xf32>
      %70 = vector.shape_cast %66 : vector<8x128xf32> to vector<1x8x128xf32>
      tpu.vector_store %arg7[%67, %c0_36, %c0_37], %70 {strides = array<i32>} : memref<16x8x128xf32, #tpu.memory_space<vmem>>, vector<1x8x128xf32>,
      %71 = arith.subf %61, %arg13 : vector<8x128xf32>
      %72 = vector.broadcast %64 : vector<8x1xf32> to vector<8x128xf32>
      %73 = arith.mulf %72, %71 : vector<8x128xf32>
      %74 = arith.addf %arg13, %73 : vector<8x128xf32>
      %75 = arith.subf %59, %arg14 : vector<8x128xf32>
      %76 = vector.broadcast %64 : vector<8x1xf32> to vector<8x128xf32>
      %77 = arith.mulf %76, %75 : vector<8x128xf32>
      %78 = arith.addf %arg14, %77 : vector<8x128xf32>
      %c1_i32_38 = arith.constant 1 : i32
      %79 = arith.addi %32, %c1_i32_38 : i32
      %80 = arith.index_cast %79 : i32 to index
      %c0_39 = arith.constant 0 : index
      %c0_40 = arith.constant 0 : index
      %81 = vector.load %arg10[%80, %c0_39, %c0_40] : memref<16x8x512xbf16, #tpu.memory_space<vmem>>, vector<1x8x512xbf16>
      %82 = vector.shape_cast %81 : vector<1x8x512xbf16> to vector<8x512xbf16>
      %83 = arith.extf %82 : vector<8x512xbf16> to vector<8x512xf32>
      %84 = arith.truncf %74 : vector<8x128xf32> to vector<8x128xbf16>
      %cst_41 = arith.constant dense<0.000000e+00> : vector<8x512xf32>
      %85 = tpu.matmul %84, %6, %cst_41 {dimension_numbers = #tpu.dot_dimension_numbers<[1], [0], [0], [1], [0, 0, 1, 1], [], []>} : vector<8x128xbf16>, vector<128x512xbf16>, vector<8x512xf32> -> vector<8x512xf32>
      %86 = arith.addf %83, %85 : vector<8x512xf32>
      %87 = vector.extract_strided_slice %86 {offsets = [0, 0], sizes = [8, 256], strides = [1, 1]} : vector<8x512xf32> to vector<8x256xf32>
      %88 = arith.negf %87 : vector<8x256xf32>
      %89 = math.exp %88 : vector<8x256xf32>
      %cst_42 = arith.constant 1.000000e+00 : f32
      %90 = vector.broadcast %cst_42 : f32 to vector<8x256xf32>
      %91 = arith.addf %90, %89 : vector<8x256xf32>
      %92 = arith.divf %90, %91 : vector<8x256xf32>
      %93 = vector.extract_strided_slice %92 {offsets = [0, 0], sizes = [8, 128], strides = [1, 1]} : vector<8x256xf32> to vector<8x128xf32>
      %94 = vector.extract_strided_slice %92 {offsets = [0, 128], sizes = [8, 128], strides = [1, 1]} : vector<8x256xf32> to vector<8x128xf32>
      %95 = vector.extract_strided_slice %86 {offsets = [0, 256], sizes = [8, 128], strides = [1, 1]} : vector<8x512xf32> to vector<8x128xf32>
      %96 = math.tanh %95 : vector<8x128xf32>
      %97 = vector.extract_strided_slice %86 {offsets = [0, 384], sizes = [8, 128], strides = [1, 1]} : vector<8x512xf32> to vector<8x128xf32>
      %98 = arith.negf %97 : vector<8x128xf32>
      %99 = math.exp %98 : vector<8x128xf32>
      %cst_43 = arith.constant 1.000000e+00 : f32
      %100 = vector.broadcast %cst_43 : f32 to vector<8x128xf32>
      %101 = arith.addf %100, %99 : vector<8x128xf32>
      %102 = arith.divf %100, %101 : vector<8x128xf32>
      %103 = arith.mulf %94, %78 : vector<8x128xf32>
      %104 = arith.mulf %93, %96 : vector<8x128xf32>
      %105 = arith.addf %103, %104 : vector<8x128xf32>
      %106 = math.tanh %105 : vector<8x128xf32>
      %107 = arith.mulf %102, %106 : vector<8x128xf32>
      %108 = arith.index_cast %79 : i32 to index
      %c0_44 = arith.constant 0 : index
      %c0_45 = arith.constant 0 : index
      %109 = vector.load %arg3[%108, %c0_44, %c0_45] : memref<16x8x1xf32, #tpu.memory_space<vmem>>, vector<1x8x1xf32>
      %110 = vector.shape_cast %109 : vector<1x8x1xf32> to vector<8x1xf32>
      %111 = vector.broadcast %110 : vector<8x1xf32> to vector<8x128xf32>
      %112 = arith.mulf %111, %107 : vector<8x128xf32>
      %113 = arith.index_cast %79 : i32 to index
      %c0_46 = arith.constant 0 : index
      %c0_47 = arith.constant 0 : index
      %114 = vector.load %arg7[%113, %c0_46, %c0_47] : memref<16x8x128xf32, #tpu.memory_space<vmem>>, vector<1x8x128xf32>
      %115 = vector.shape_cast %114 : vector<1x8x128xf32> to vector<8x128xf32>
      %116 = vector.shape_cast %112 : vector<8x128xf32> to vector<1x8x128xf32>
      tpu.vector_store %arg7[%113, %c0_46, %c0_47], %116 {strides = array<i32>} : memref<16x8x128xf32, #tpu.memory_space<vmem>>, vector<1x8x128xf32>,
      %117 = arith.subf %107, %74 : vector<8x128xf32>
      %118 = vector.broadcast %110 : vector<8x1xf32> to vector<8x128xf32>
      %119 = arith.mulf %118, %117 : vector<8x128xf32>
      %120 = arith.addf %74, %119 : vector<8x128xf32>
      %121 = arith.subf %105, %78 : vector<8x128xf32>
      %122 = vector.broadcast %110 : vector<8x1xf32> to vector<8x128xf32>
      %123 = arith.mulf %122, %121 : vector<8x128xf32>
      %124 = arith.addf %78, %123 : vector<8x128xf32>
      %c2_i32_48 = arith.constant 2 : i32
      %125 = arith.addi %32, %c2_i32_48 : i32
      %126 = arith.index_cast %125 : i32 to index
      %c0_49 = arith.constant 0 : index
      %c0_50 = arith.constant 0 : index
      %127 = vector.load %arg10[%126, %c0_49, %c0_50] : memref<16x8x512xbf16, #tpu.memory_space<vmem>>, vector<1x8x512xbf16>
      %128 = vector.shape_cast %127 : vector<1x8x512xbf16> to vector<8x512xbf16>
      %129 = arith.extf %128 : vector<8x512xbf16> to vector<8x512xf32>
      %130 = arith.truncf %120 : vector<8x128xf32> to vector<8x128xbf16>
      %cst_51 = arith.constant dense<0.000000e+00> : vector<8x512xf32>
      %131 = tpu.matmul %130, %6, %cst_51 {dimension_numbers = #tpu.dot_dimension_numbers<[1], [0], [0], [1], [0, 0, 1, 1], [], []>} : vector<8x128xbf16>, vector<128x512xbf16>, vector<8x512xf32> -> vector<8x512xf32>
      %132 = arith.addf %129, %131 : vector<8x512xf32>
      %133 = vector.extract_strided_slice %132 {offsets = [0, 0], sizes = [8, 256], strides = [1, 1]} : vector<8x512xf32> to vector<8x256xf32>
      %134 = arith.negf %133 : vector<8x256xf32>
      %135 = math.exp %134 : vector<8x256xf32>
      %cst_52 = arith.constant 1.000000e+00 : f32
      %136 = vector.broadcast %cst_52 : f32 to vector<8x256xf32>
      %137 = arith.addf %136, %135 : vector<8x256xf32>
      %138 = arith.divf %136, %137 : vector<8x256xf32>
      %139 = vector.extract_strided_slice %138 {offsets = [0, 0], sizes = [8, 128], strides = [1, 1]} : vector<8x256xf32> to vector<8x128xf32>
      %140 = vector.extract_strided_slice %138 {offsets = [0, 128], sizes = [8, 128], strides = [1, 1]} : vector<8x256xf32> to vector<8x128xf32>
      %141 = vector.extract_strided_slice %132 {offsets = [0, 256], sizes = [8, 128], strides = [1, 1]} : vector<8x512xf32> to vector<8x128xf32>
      %142 = math.tanh %141 : vector<8x128xf32>
      %143 = vector.extract_strided_slice %132 {offsets = [0, 384], sizes = [8, 128], strides = [1, 1]} : vector<8x512xf32> to vector<8x128xf32>
      %144 = arith.negf %143 : vector<8x128xf32>
      %145 = math.exp %144 : vector<8x128xf32>
      %cst_53 = arith.constant 1.000000e+00 : f32
      %146 = vector.broadcast %cst_53 : f32 to vector<8x128xf32>
      %147 = arith.addf %146, %145 : vector<8x128xf32>
      %148 = arith.divf %146, %147 : vector<8x128xf32>
      %149 = arith.mulf %140, %124 : vector<8x128xf32>
      %150 = arith.mulf %139, %142 : vector<8x128xf32>
      %151 = arith.addf %149, %150 : vector<8x128xf32>
      %152 = math.tanh %151 : vector<8x128xf32>
      %153 = arith.mulf %148, %152 : vector<8x128xf32>
      %154 = arith.index_cast %125 : i32 to index
      %c0_54 = arith.constant 0 : index
      %c0_55 = arith.constant 0 : index
      %155 = vector.load %arg3[%154, %c0_54, %c0_55] : memref<16x8x1xf32, #tpu.memory_space<vmem>>, vector<1x8x1xf32>
      %156 = vector.shape_cast %155 : vector<1x8x1xf32> to vector<8x1xf32>
      %157 = vector.broadcast %156 : vector<8x1xf32> to vector<8x128xf32>
      %158 = arith.mulf %157, %153 : vector<8x128xf32>
      %159 = arith.index_cast %125 : i32 to index
      %c0_56 = arith.constant 0 : index
      %c0_57 = arith.constant 0 : index
      %160 = vector.load %arg7[%159, %c0_56, %c0_57] : memref<16x8x128xf32, #tpu.memory_space<vmem>>, vector<1x8x128xf32>
      %161 = vector.shape_cast %160 : vector<1x8x128xf32> to vector<8x128xf32>
      %162 = vector.shape_cast %158 : vector<8x128xf32> to vector<1x8x128xf32>
      tpu.vector_store %arg7[%159, %c0_56, %c0_57], %162 {strides = array<i32>} : memref<16x8x128xf32, #tpu.memory_space<vmem>>, vector<1x8x128xf32>,
      %163 = arith.subf %153, %120 : vector<8x128xf32>
      %164 = vector.broadcast %156 : vector<8x1xf32> to vector<8x128xf32>
      %165 = arith.mulf %164, %163 : vector<8x128xf32>
      %166 = arith.addf %120, %165 : vector<8x128xf32>
      %167 = arith.subf %151, %124 : vector<8x128xf32>
      %168 = vector.broadcast %156 : vector<8x1xf32> to vector<8x128xf32>
      %169 = arith.mulf %168, %167 : vector<8x128xf32>
      %170 = arith.addf %124, %169 : vector<8x128xf32>
      %c3_i32 = arith.constant 3 : i32
      %171 = arith.addi %32, %c3_i32 : i32
      %172 = arith.index_cast %171 : i32 to index
      %c0_58 = arith.constant 0 : index
      %c0_59 = arith.constant 0 : index
      %173 = vector.load %arg10[%172, %c0_58, %c0_59] : memref<16x8x512xbf16, #tpu.memory_space<vmem>>, vector<1x8x512xbf16>
      %174 = vector.shape_cast %173 : vector<1x8x512xbf16> to vector<8x512xbf16>
      %175 = arith.extf %174 : vector<8x512xbf16> to vector<8x512xf32>
      %176 = arith.truncf %166 : vector<8x128xf32> to vector<8x128xbf16>
      %cst_60 = arith.constant dense<0.000000e+00> : vector<8x512xf32>
      %177 = tpu.matmul %176, %6, %cst_60 {dimension_numbers = #tpu.dot_dimension_numbers<[1], [0], [0], [1], [0, 0, 1, 1], [], []>} : vector<8x128xbf16>, vector<128x512xbf16>, vector<8x512xf32> -> vector<8x512xf32>
      %178 = arith.addf %175, %177 : vector<8x512xf32>
      %179 = vector.extract_strided_slice %178 {offsets = [0, 0], sizes = [8, 256], strides = [1, 1]} : vector<8x512xf32> to vector<8x256xf32>
      %180 = arith.negf %179 : vector<8x256xf32>
      %181 = math.exp %180 : vector<8x256xf32>
      %cst_61 = arith.constant 1.000000e+00 : f32
      %182 = vector.broadcast %cst_61 : f32 to vector<8x256xf32>
      %183 = arith.addf %182, %181 : vector<8x256xf32>
      %184 = arith.divf %182, %183 : vector<8x256xf32>
      %185 = vector.extract_strided_slice %184 {offsets = [0, 0], sizes = [8, 128], strides = [1, 1]} : vector<8x256xf32> to vector<8x128xf32>
      %186 = vector.extract_strided_slice %184 {offsets = [0, 128], sizes = [8, 128], strides = [1, 1]} : vector<8x256xf32> to vector<8x128xf32>
      %187 = vector.extract_strided_slice %178 {offsets = [0, 256], sizes = [8, 128], strides = [1, 1]} : vector<8x512xf32> to vector<8x128xf32>
      %188 = math.tanh %187 : vector<8x128xf32>
      %189 = vector.extract_strided_slice %178 {offsets = [0, 384], sizes = [8, 128], strides = [1, 1]} : vector<8x512xf32> to vector<8x128xf32>
      %190 = arith.negf %189 : vector<8x128xf32>
      %191 = math.exp %190 : vector<8x128xf32>
      %cst_62 = arith.constant 1.000000e+00 : f32
      %192 = vector.broadcast %cst_62 : f32 to vector<8x128xf32>
      %193 = arith.addf %192, %191 : vector<8x128xf32>
      %194 = arith.divf %192, %193 : vector<8x128xf32>
      %195 = arith.mulf %186, %170 : vector<8x128xf32>
      %196 = arith.mulf %185, %188 : vector<8x128xf32>
      %197 = arith.addf %195, %196 : vector<8x128xf32>
      %198 = math.tanh %197 : vector<8x128xf32>
      %199 = arith.mulf %194, %198 : vector<8x128xf32>
      %200 = arith.index_cast %171 : i32 to index
      %c0_63 = arith.constant 0 : index
      %c0_64 = arith.constant 0 : index
      %201 = vector.load %arg3[%200, %c0_63, %c0_64] : memref<16x8x1xf32, #tpu.memory_space<vmem>>, vector<1x8x1xf32>
      %202 = vector.shape_cast %201 : vector<1x8x1xf32> to vector<8x1xf32>
      %203 = vector.broadcast %202 : vector<8x1xf32> to vector<8x128xf32>
      %204 = arith.mulf %203, %199 : vector<8x128xf32>
      %205 = arith.index_cast %171 : i32 to index
      %c0_65 = arith.constant 0 : index
      %c0_66 = arith.constant 0 : index
      %206 = vector.load %arg7[%205, %c0_65, %c0_66] : memref<16x8x128xf32, #tpu.memory_space<vmem>>, vector<1x8x128xf32>
      %207 = vector.shape_cast %206 : vector<1x8x128xf32> to vector<8x128xf32>
      %208 = vector.shape_cast %204 : vector<8x128xf32> to vector<1x8x128xf32>
      tpu.vector_store %arg7[%205, %c0_65, %c0_66], %208 {strides = array<i32>} : memref<16x8x128xf32, #tpu.memory_space<vmem>>, vector<1x8x128xf32>,
      %209 = arith.subf %199, %166 : vector<8x128xf32>
      %210 = vector.broadcast %202 : vector<8x1xf32> to vector<8x128xf32>
      %211 = arith.mulf %210, %209 : vector<8x128xf32>
      %212 = arith.addf %166, %211 : vector<8x128xf32>
      %213 = arith.subf %197, %170 : vector<8x128xf32>
      %214 = vector.broadcast %202 : vector<8x1xf32> to vector<8x128xf32>
      %215 = arith.mulf %214, %213 : vector<8x128xf32>
      %216 = arith.addf %170, %215 : vector<8x128xf32>
      %c4_i32 = arith.constant 4 : i32
      %217 = arith.addi %32, %c4_i32 : i32
      %218 = arith.index_cast %217 : i32 to index
      %c0_67 = arith.constant 0 : index
      %c0_68 = arith.constant 0 : index
      %219 = vector.load %arg10[%218, %c0_67, %c0_68] : memref<16x8x512xbf16, #tpu.memory_space<vmem>>, vector<1x8x512xbf16>
      %220 = vector.shape_cast %219 : vector<1x8x512xbf16> to vector<8x512xbf16>
      %221 = arith.extf %220 : vector<8x512xbf16> to vector<8x512xf32>
      %222 = arith.truncf %212 : vector<8x128xf32> to vector<8x128xbf16>
      %cst_69 = arith.constant dense<0.000000e+00> : vector<8x512xf32>
      %223 = tpu.matmul %222, %6, %cst_69 {dimension_numbers = #tpu.dot_dimension_numbers<[1], [0], [0], [1], [0, 0, 1, 1], [], []>} : vector<8x128xbf16>, vector<128x512xbf16>, vector<8x512xf32> -> vector<8x512xf32>
      %224 = arith.addf %221, %223 : vector<8x512xf32>
      %225 = vector.extract_strided_slice %224 {offsets = [0, 0], sizes = [8, 256], strides = [1, 1]} : vector<8x512xf32> to vector<8x256xf32>
      %226 = arith.negf %225 : vector<8x256xf32>
      %227 = math.exp %226 : vector<8x256xf32>
      %cst_70 = arith.constant 1.000000e+00 : f32
      %228 = vector.broadcast %cst_70 : f32 to vector<8x256xf32>
      %229 = arith.addf %228, %227 : vector<8x256xf32>
      %230 = arith.divf %228, %229 : vector<8x256xf32>
      %231 = vector.extract_strided_slice %230 {offsets = [0, 0], sizes = [8, 128], strides = [1, 1]} : vector<8x256xf32> to vector<8x128xf32>
      %232 = vector.extract_strided_slice %230 {offsets = [0, 128], sizes = [8, 128], strides = [1, 1]} : vector<8x256xf32> to vector<8x128xf32>
      %233 = vector.extract_strided_slice %224 {offsets = [0, 256], sizes = [8, 128], strides = [1, 1]} : vector<8x512xf32> to vector<8x128xf32>
      %234 = math.tanh %233 : vector<8x128xf32>
      %235 = vector.extract_strided_slice %224 {offsets = [0, 384], sizes = [8, 128], strides = [1, 1]} : vector<8x512xf32> to vector<8x128xf32>
      %236 = arith.negf %235 : vector<8x128xf32>
      %237 = math.exp %236 : vector<8x128xf32>
      %cst_71 = arith.constant 1.000000e+00 : f32
      %238 = vector.broadcast %cst_71 : f32 to vector<8x128xf32>
      %239 = arith.addf %238, %237 : vector<8x128xf32>
      %240 = arith.divf %238, %239 : vector<8x128xf32>
      %241 = arith.mulf %232, %216 : vector<8x128xf32>
      %242 = arith.mulf %231, %234 : vector<8x128xf32>
      %243 = arith.addf %241, %242 : vector<8x128xf32>
      %244 = math.tanh %243 : vector<8x128xf32>
      %245 = arith.mulf %240, %244 : vector<8x128xf32>
      %246 = arith.index_cast %217 : i32 to index
      %c0_72 = arith.constant 0 : index
      %c0_73 = arith.constant 0 : index
      %247 = vector.load %arg3[%246, %c0_72, %c0_73] : memref<16x8x1xf32, #tpu.memory_space<vmem>>, vector<1x8x1xf32>
      %248 = vector.shape_cast %247 : vector<1x8x1xf32> to vector<8x1xf32>
      %249 = vector.broadcast %248 : vector<8x1xf32> to vector<8x128xf32>
      %250 = arith.mulf %249, %245 : vector<8x128xf32>
      %251 = arith.index_cast %217 : i32 to index
      %c0_74 = arith.constant 0 : index
      %c0_75 = arith.constant 0 : index
      %252 = vector.load %arg7[%251, %c0_74, %c0_75] : memref<16x8x128xf32, #tpu.memory_space<vmem>>, vector<1x8x128xf32>
      %253 = vector.shape_cast %252 : vector<1x8x128xf32> to vector<8x128xf32>
      %254 = vector.shape_cast %250 : vector<8x128xf32> to vector<1x8x128xf32>
      tpu.vector_store %arg7[%251, %c0_74, %c0_75], %254 {strides = array<i32>} : memref<16x8x128xf32, #tpu.memory_space<vmem>>, vector<1x8x128xf32>,
      %255 = arith.subf %245, %212 : vector<8x128xf32>
      %256 = vector.broadcast %248 : vector<8x1xf32> to vector<8x128xf32>
      %257 = arith.mulf %256, %255 : vector<8x128xf32>
      %258 = arith.addf %212, %257 : vector<8x128xf32>
      %259 = arith.subf %243, %216 : vector<8x128xf32>
      %260 = vector.broadcast %248 : vector<8x1xf32> to vector<8x128xf32>
      %261 = arith.mulf %260, %259 : vector<8x128xf32>
      %262 = arith.addf %216, %261 : vector<8x128xf32>
      %c5_i32 = arith.constant 5 : i32
      %263 = arith.addi %32, %c5_i32 : i32
      %264 = arith.index_cast %263 : i32 to index
      %c0_76 = arith.constant 0 : index
      %c0_77 = arith.constant 0 : index
      %265 = vector.load %arg10[%264, %c0_76, %c0_77] : memref<16x8x512xbf16, #tpu.memory_space<vmem>>, vector<1x8x512xbf16>
      %266 = vector.shape_cast %265 : vector<1x8x512xbf16> to vector<8x512xbf16>
      %267 = arith.extf %266 : vector<8x512xbf16> to vector<8x512xf32>
      %268 = arith.truncf %258 : vector<8x128xf32> to vector<8x128xbf16>
      %cst_78 = arith.constant dense<0.000000e+00> : vector<8x512xf32>
      %269 = tpu.matmul %268, %6, %cst_78 {dimension_numbers = #tpu.dot_dimension_numbers<[1], [0], [0], [1], [0, 0, 1, 1], [], []>} : vector<8x128xbf16>, vector<128x512xbf16>, vector<8x512xf32> -> vector<8x512xf32>
      %270 = arith.addf %267, %269 : vector<8x512xf32>
      %271 = vector.extract_strided_slice %270 {offsets = [0, 0], sizes = [8, 256], strides = [1, 1]} : vector<8x512xf32> to vector<8x256xf32>
      %272 = arith.negf %271 : vector<8x256xf32>
      %273 = math.exp %272 : vector<8x256xf32>
      %cst_79 = arith.constant 1.000000e+00 : f32
      %274 = vector.broadcast %cst_79 : f32 to vector<8x256xf32>
      %275 = arith.addf %274, %273 : vector<8x256xf32>
      %276 = arith.divf %274, %275 : vector<8x256xf32>
      %277 = vector.extract_strided_slice %276 {offsets = [0, 0], sizes = [8, 128], strides = [1, 1]} : vector<8x256xf32> to vector<8x128xf32>
      %278 = vector.extract_strided_slice %276 {offsets = [0, 128], sizes = [8, 128], strides = [1, 1]} : vector<8x256xf32> to vector<8x128xf32>
      %279 = vector.extract_strided_slice %270 {offsets = [0, 256], sizes = [8, 128], strides = [1, 1]} : vector<8x512xf32> to vector<8x128xf32>
      %280 = math.tanh %279 : vector<8x128xf32>
      %281 = vector.extract_strided_slice %270 {offsets = [0, 384], sizes = [8, 128], strides = [1, 1]} : vector<8x512xf32> to vector<8x128xf32>
      %282 = arith.negf %281 : vector<8x128xf32>
      %283 = math.exp %282 : vector<8x128xf32>
      %cst_80 = arith.constant 1.000000e+00 : f32
      %284 = vector.broadcast %cst_80 : f32 to vector<8x128xf32>
      %285 = arith.addf %284, %283 : vector<8x128xf32>
      %286 = arith.divf %284, %285 : vector<8x128xf32>
      %287 = arith.mulf %278, %262 : vector<8x128xf32>
      %288 = arith.mulf %277, %280 : vector<8x128xf32>
      %289 = arith.addf %287, %288 : vector<8x128xf32>
      %290 = math.tanh %289 : vector<8x128xf32>
      %291 = arith.mulf %286, %290 : vector<8x128xf32>
      %292 = arith.index_cast %263 : i32 to index
      %c0_81 = arith.constant 0 : index
      %c0_82 = arith.constant 0 : index
      %293 = vector.load %arg3[%292, %c0_81, %c0_82] : memref<16x8x1xf32, #tpu.memory_space<vmem>>, vector<1x8x1xf32>
      %294 = vector.shape_cast %293 : vector<1x8x1xf32> to vector<8x1xf32>
      %295 = vector.broadcast %294 : vector<8x1xf32> to vector<8x128xf32>
      %296 = arith.mulf %295, %291 : vector<8x128xf32>
      %297 = arith.index_cast %263 : i32 to index
      %c0_83 = arith.constant 0 : index
      %c0_84 = arith.constant 0 : index
      %298 = vector.load %arg7[%297, %c0_83, %c0_84] : memref<16x8x128xf32, #tpu.memory_space<vmem>>, vector<1x8x128xf32>
      %299 = vector.shape_cast %298 : vector<1x8x128xf32> to vector<8x128xf32>
      %300 = vector.shape_cast %296 : vector<8x128xf32> to vector<1x8x128xf32>
      tpu.vector_store %arg7[%297, %c0_83, %c0_84], %300 {strides = array<i32>} : memref<16x8x128xf32, #tpu.memory_space<vmem>>, vector<1x8x128xf32>,
      %301 = arith.subf %291, %258 : vector<8x128xf32>
      %302 = vector.broadcast %294 : vector<8x1xf32> to vector<8x128xf32>
      %303 = arith.mulf %302, %301 : vector<8x128xf32>
      %304 = arith.addf %258, %303 : vector<8x128xf32>
      %305 = arith.subf %289, %262 : vector<8x128xf32>
      %306 = vector.broadcast %294 : vector<8x1xf32> to vector<8x128xf32>
      %307 = arith.mulf %306, %305 : vector<8x128xf32>
      %308 = arith.addf %262, %307 : vector<8x128xf32>
      %c6_i32 = arith.constant 6 : i32
      %309 = arith.addi %32, %c6_i32 : i32
      %310 = arith.index_cast %309 : i32 to index
      %c0_85 = arith.constant 0 : index
      %c0_86 = arith.constant 0 : index
      %311 = vector.load %arg10[%310, %c0_85, %c0_86] : memref<16x8x512xbf16, #tpu.memory_space<vmem>>, vector<1x8x512xbf16>
      %312 = vector.shape_cast %311 : vector<1x8x512xbf16> to vector<8x512xbf16>
      %313 = arith.extf %312 : vector<8x512xbf16> to vector<8x512xf32>
      %314 = arith.truncf %304 : vector<8x128xf32> to vector<8x128xbf16>
      %cst_87 = arith.constant dense<0.000000e+00> : vector<8x512xf32>
      %315 = tpu.matmul %314, %6, %cst_87 {dimension_numbers = #tpu.dot_dimension_numbers<[1], [0], [0], [1], [0, 0, 1, 1], [], []>} : vector<8x128xbf16>, vector<128x512xbf16>, vector<8x512xf32> -> vector<8x512xf32>
      %316 = arith.addf %313, %315 : vector<8x512xf32>
      %317 = vector.extract_strided_slice %316 {offsets = [0, 0], sizes = [8, 256], strides = [1, 1]} : vector<8x512xf32> to vector<8x256xf32>
      %318 = arith.negf %317 : vector<8x256xf32>
      %319 = math.exp %318 : vector<8x256xf32>
      %cst_88 = arith.constant 1.000000e+00 : f32
      %320 = vector.broadcast %cst_88 : f32 to vector<8x256xf32>
      %321 = arith.addf %320, %319 : vector<8x256xf32>
      %322 = arith.divf %320, %321 : vector<8x256xf32>
      %323 = vector.extract_strided_slice %322 {offsets = [0, 0], sizes = [8, 128], strides = [1, 1]} : vector<8x256xf32> to vector<8x128xf32>
      %324 = vector.extract_strided_slice %322 {offsets = [0, 128], sizes = [8, 128], strides = [1, 1]} : vector<8x256xf32> to vector<8x128xf32>
      %325 = vector.extract_strided_slice %316 {offsets = [0, 256], sizes = [8, 128], strides = [1, 1]} : vector<8x512xf32> to vector<8x128xf32>
      %326 = math.tanh %325 : vector<8x128xf32>
      %327 = vector.extract_strided_slice %316 {offsets = [0, 384], sizes = [8, 128], strides = [1, 1]} : vector<8x512xf32> to vector<8x128xf32>
      %328 = arith.negf %327 : vector<8x128xf32>
      %329 = math.exp %328 : vector<8x128xf32>
      %cst_89 = arith.constant 1.000000e+00 : f32
      %330 = vector.broadcast %cst_89 : f32 to vector<8x128xf32>
      %331 = arith.addf %330, %329 : vector<8x128xf32>
      %332 = arith.divf %330, %331 : vector<8x128xf32>
      %333 = arith.mulf %324, %308 : vector<8x128xf32>
      %334 = arith.mulf %323, %326 : vector<8x128xf32>
      %335 = arith.addf %333, %334 : vector<8x128xf32>
      %336 = math.tanh %335 : vector<8x128xf32>
      %337 = arith.mulf %332, %336 : vector<8x128xf32>
      %338 = arith.index_cast %309 : i32 to index
      %c0_90 = arith.constant 0 : index
      %c0_91 = arith.constant 0 : index
      %339 = vector.load %arg3[%338, %c0_90, %c0_91] : memref<16x8x1xf32, #tpu.memory_space<vmem>>, vector<1x8x1xf32>
      %340 = vector.shape_cast %339 : vector<1x8x1xf32> to vector<8x1xf32>
      %341 = vector.broadcast %340 : vector<8x1xf32> to vector<8x128xf32>
      %342 = arith.mulf %341, %337 : vector<8x128xf32>
      %343 = arith.index_cast %309 : i32 to index
      %c0_92 = arith.constant 0 : index
      %c0_93 = arith.constant 0 : index
      %344 = vector.load %arg7[%343, %c0_92, %c0_93] : memref<16x8x128xf32, #tpu.memory_space<vmem>>, vector<1x8x128xf32>
      %345 = vector.shape_cast %344 : vector<1x8x128xf32> to vector<8x128xf32>
      %346 = vector.shape_cast %342 : vector<8x128xf32> to vector<1x8x128xf32>
      tpu.vector_store %arg7[%343, %c0_92, %c0_93], %346 {strides = array<i32>} : memref<16x8x128xf32, #tpu.memory_space<vmem>>, vector<1x8x128xf32>,
      %347 = arith.subf %337, %304 : vector<8x128xf32>
      %348 = vector.broadcast %340 : vector<8x1xf32> to vector<8x128xf32>
      %349 = arith.mulf %348, %347 : vector<8x128xf32>
      %350 = arith.addf %304, %349 : vector<8x128xf32>
      %351 = arith.subf %335, %308 : vector<8x128xf32>
      %352 = vector.broadcast %340 : vector<8x1xf32> to vector<8x128xf32>
      %353 = arith.mulf %352, %351 : vector<8x128xf32>
      %354 = arith.addf %308, %353 : vector<8x128xf32>
      %c7_i32 = arith.constant 7 : i32
      %355 = arith.addi %32, %c7_i32 : i32
      %356 = arith.index_cast %355 : i32 to index
      %c0_94 = arith.constant 0 : index
      %c0_95 = arith.constant 0 : index
      %357 = vector.load %arg10[%356, %c0_94, %c0_95] : memref<16x8x512xbf16, #tpu.memory_space<vmem>>, vector<1x8x512xbf16>
      %358 = vector.shape_cast %357 : vector<1x8x512xbf16> to vector<8x512xbf16>
      %359 = arith.extf %358 : vector<8x512xbf16> to vector<8x512xf32>
      %360 = arith.truncf %350 : vector<8x128xf32> to vector<8x128xbf16>
      %cst_96 = arith.constant dense<0.000000e+00> : vector<8x512xf32>
      %361 = tpu.matmul %360, %6, %cst_96 {dimension_numbers = #tpu.dot_dimension_numbers<[1], [0], [0], [1], [0, 0, 1, 1], [], []>} : vector<8x128xbf16>, vector<128x512xbf16>, vector<8x512xf32> -> vector<8x512xf32>
      %362 = arith.addf %359, %361 : vector<8x512xf32>
      %363 = vector.extract_strided_slice %362 {offsets = [0, 0], sizes = [8, 256], strides = [1, 1]} : vector<8x512xf32> to vector<8x256xf32>
      %364 = arith.negf %363 : vector<8x256xf32>
      %365 = math.exp %364 : vector<8x256xf32>
      %cst_97 = arith.constant 1.000000e+00 : f32
      %366 = vector.broadcast %cst_97 : f32 to vector<8x256xf32>
      %367 = arith.addf %366, %365 : vector<8x256xf32>
      %368 = arith.divf %366, %367 : vector<8x256xf32>
      %369 = vector.extract_strided_slice %368 {offsets = [0, 0], sizes = [8, 128], strides = [1, 1]} : vector<8x256xf32> to vector<8x128xf32>
      %370 = vector.extract_strided_slice %368 {offsets = [0, 128], sizes = [8, 128], strides = [1, 1]} : vector<8x256xf32> to vector<8x128xf32>
      %371 = vector.extract_strided_slice %362 {offsets = [0, 256], sizes = [8, 128], strides = [1, 1]} : vector<8x512xf32> to vector<8x128xf32>
      %372 = math.tanh %371 : vector<8x128xf32>
      %373 = vector.extract_strided_slice %362 {offsets = [0, 384], sizes = [8, 128], strides = [1, 1]} : vector<8x512xf32> to vector<8x128xf32>
      %374 = arith.negf %373 : vector<8x128xf32>
      %375 = math.exp %374 : vector<8x128xf32>
      %cst_98 = arith.constant 1.000000e+00 : f32
      %376 = vector.broadcast %cst_98 : f32 to vector<8x128xf32>
      %377 = arith.addf %376, %375 : vector<8x128xf32>
      %378 = arith.divf %376, %377 : vector<8x128xf32>
      %379 = arith.mulf %370, %354 : vector<8x128xf32>
      %380 = arith.mulf %369, %372 : vector<8x128xf32>
      %381 = arith.addf %379, %380 : vector<8x128xf32>
      %382 = math.tanh %381 : vector<8x128xf32>
      %383 = arith.mulf %378, %382 : vector<8x128xf32>
      %384 = arith.index_cast %355 : i32 to index
      %c0_99 = arith.constant 0 : index
      %c0_100 = arith.constant 0 : index
      %385 = vector.load %arg3[%384, %c0_99, %c0_100] : memref<16x8x1xf32, #tpu.memory_space<vmem>>, vector<1x8x1xf32>
      %386 = vector.shape_cast %385 : vector<1x8x1xf32> to vector<8x1xf32>
      %387 = vector.broadcast %386 : vector<8x1xf32> to vector<8x128xf32>
      %388 = arith.mulf %387, %383 : vector<8x128xf32>
      %389 = arith.index_cast %355 : i32 to index
      %c0_101 = arith.constant 0 : index
      %c0_102 = arith.constant 0 : index
      %390 = vector.load %arg7[%389, %c0_101, %c0_102] : memref<16x8x128xf32, #tpu.memory_space<vmem>>, vector<1x8x128xf32>
      %391 = vector.shape_cast %390 : vector<1x8x128xf32> to vector<8x128xf32>
      %392 = vector.shape_cast %388 : vector<8x128xf32> to vector<1x8x128xf32>
      tpu.vector_store %arg7[%389, %c0_101, %c0_102], %392 {strides = array<i32>} : memref<16x8x128xf32, #tpu.memory_space<vmem>>, vector<1x8x128xf32>,
      %393 = arith.subf %383, %350 : vector<8x128xf32>
      %394 = vector.broadcast %386 : vector<8x1xf32> to vector<8x128xf32>
      %395 = arith.mulf %394, %393 : vector<8x128xf32>
      %396 = arith.addf %350, %395 : vector<8x128xf32>
      %397 = arith.subf %381, %354 : vector<8x128xf32>
      %398 = vector.broadcast %386 : vector<8x1xf32> to vector<8x128xf32>
      %399 = arith.mulf %398, %397 : vector<8x128xf32>
      %400 = arith.addf %354, %399 : vector<8x128xf32>
      %c8_i32_103 = arith.constant 8 : i32
      scf.yield %396, %400 : vector<8x128xf32>, vector<8x128xf32>
    }
    %c2_i32_18 = arith.constant 2 : i32
    %c0_19 = arith.constant 0 : index
    %c0_20 = arith.constant 0 : index
    %c0_21 = arith.constant 0 : index
    %22 = vector.load %arg8[%c0_19, %c0_20, %c0_21] : memref<1x8x128xf32, #tpu.memory_space<vmem>>, vector<1x8x128xf32>
    %23 = vector.shape_cast %22 : vector<1x8x128xf32> to vector<8x128xf32>
    %24 = vector.shape_cast %21#0 : vector<8x128xf32> to vector<1x8x128xf32>
    tpu.vector_store %arg8[%c0_19, %c0_20, %c0_21], %24 {strides = array<i32>} : memref<1x8x128xf32, #tpu.memory_space<vmem>>, vector<1x8x128xf32>,
    %c0_22 = arith.constant 0 : index
    %c0_23 = arith.constant 0 : index
    %c0_24 = arith.constant 0 : index
    %25 = vector.load %arg9[%c0_22, %c0_23, %c0_24] : memref<1x8x128xf32, #tpu.memory_space<vmem>>, vector<1x8x128xf32>
    %26 = vector.shape_cast %25 : vector<1x8x128xf32> to vector<8x128xf32>
    %27 = vector.shape_cast %21#1 : vector<8x128xf32> to vector<1x8x128xf32>
    tpu.vector_store %arg9[%c0_22, %c0_23, %c0_24], %27 {strides = array<i32>} : memref<1x8x128xf32, #tpu.memory_space<vmem>>, vector<1x8x128xf32>,
    return
  }
  func.func @transform_1(%arg0: i32, %arg1: i32) -> (i32, i32, i32) {
    %c0_i32 = arith.constant 0 : i32
    %c0_i32_0 = arith.constant 0 : i32
    %c0_i32_1 = arith.constant 0 : i32
    return %c0_i32, %arg0, %c0_i32_0 : i32, i32, i32
  }
  func.func @transform_2(%arg0: i32, %arg1: i32) -> (i32, i32, i32) {
    %c0_i32 = arith.constant 0 : i32
    %c0_i32_0 = arith.constant 0 : i32
    %c0_i32_1 = arith.constant 0 : i32
    return %arg1, %c0_i32, %c0_i32_0 : i32, i32, i32
  }
  func.func @transform_3(%arg0: i32, %arg1: i32) -> (i32, i32, i32) {
    %c0_i32 = arith.constant 0 : i32
    %c0_i32_0 = arith.constant 0 : i32
    %c0_i32_1 = arith.constant 0 : i32
    return %arg1, %c0_i32, %c0_i32_0 : i32, i32, i32
  }
  func.func @transform_4(%arg0: i32, %arg1: i32) -> (i32, i32, i32) {
    %c0_i32 = arith.constant 0 : i32
    %c0_i32_0 = arith.constant 0 : i32
    %c0_i32_1 = arith.constant 0 : i32
    return %arg1, %c0_i32, %c0_i32_0 : i32, i32, i32
  }
  func.func @transform_5(%arg0: i32, %arg1: i32) -> (i32, i32, i32) {
    %c0_i32 = arith.constant 0 : i32
    %c0_i32_0 = arith.constant 0 : i32
    %c0_i32_1 = arith.constant 0 : i32
    return %c0_i32, %arg0, %c0_i32_0 : i32, i32, i32
  }
  func.func @transform_6(%arg0: i32, %arg1: i32) -> (i32, i32, i32) {
    %c0_i32 = arith.constant 0 : i32
    %c0_i32_0 = arith.constant 0 : i32
    return %arg1, %arg0, %c0_i32 : i32, i32, i32
  }
  func.func @transform_7(%arg0: i32, %arg1: i32) -> (i32, i32, i32) {
    %c0_i32 = arith.constant 0 : i32
    %c0_i32_0 = arith.constant 0 : i32
    return %arg1, %arg0, %c0_i32 : i32, i32, i32
  }
}

</mosaic_0001>

<bundles_post_ra>
// kernel: encoder_forward.1
= control target key start
LH: loop header
LB: loop body
LE: loop exit
PB: predicated region body
PF: predicated region fallthrough
CT: control target
= control target key end

     0   :  { %s3495_s24 = smov 0   ;;  %s3497_s25 = smov 0   ;;  %s4592_s0 = inlined_call_operand.vmem [shape: f32[1,16,8,128], index: 0, kind: input, shape index: {}]   ;;  %s4593_s1 = inlined_call_operand.vmem [shape: f32[16,8,1], index: 1, kind: input, shape index: {}]   ;;  %s4594_s2 = inlined_call_operand.vmem [shape: bf16[2,128,512], index: 2, kind: input, shape index: {}]   ;;  %s4595_s3 = inlined_call_operand.vmem [shape: bf16[2,128,512], index: 3, kind: input, shape index: {}]   ;;  %s4596_s4 = inlined_call_operand.vmem [shape: f32[2,1,512], index: 4, kind: input, shape index: {}]   ;;  %s4597_s5 = inlined_call_operand.vmem [shape: f32[16,8,128], index: 5, kind: output, shape index: {0}]   ;;  %s4598_s6 = inlined_call_operand.vmem [shape: f32[2,8,128], index: 6, kind: output, shape index: {1}]   ;;  %s4599_s7 = inlined_call_operand.vmem [shape: f32[2,8,128], index: 7, kind: output, shape index: {2}]  }
   0x1   :  { %s3499_s26 = smov 0  }
   0x2 LB: > { %s27_s27 = sadd.s32 1, %s3434_s25  ;;  %p2881_p0 = scmp.ge.s32.totalorder %s3438_s26, 1  ;;  %s3438_s26 = sphi %s3499_s26, %s18_s26   ;;  %s3434_s25 = sphi %s3497_s25, %s4827_s25   ;;  %s3430_s24 = sphi %s3495_s24, %s4826_s24  }
   0x3   : > { %p28_p1 = scmp.ge.s32.totalorder %s27_s27, 2  ;;  %p262_p2 = scmp.lt.s32.totalorder %s3438_s26, 3 }
   0x5   : > { %s4829_s27 = smov (%p28_p1, %s27_s27), 0  ;;  %p263_p3 = pnand %p2881_p0, %p262_p2 }
   0x7   : > { %266 = sbr.rel (%p263_p3) target bundleno = 2667 (0xa6b), region = 36 }
   0xc   : > { %p322_p4 = scmp.lt.s32.totalorder %s3430_s24, 1  ;;  %p2889_p5 = scmp.ne.s32.totalorder %s3430_s24, 0 }
   0xe   : > { %s323_s28 = scalar_select %p322_p4, %s3430_s24, 1 }
   0xf   : > { %358 = sbr.rel (%p2889_p5) target bundleno = 32 (0x20), region = 40 }
  0x10   : > { %s3115_s29 = sshll.u32 %s323_s28, 8  ;;  %s2886_s30 = sshll.u32 %s323_s28, 2 }
  0x11   : > { %s3516_s10 = scalar_lea.vmem %s4594_s2, %s3115_s29  ;;  %s3521_s13 = scalar_lea.vmem %s4595_s3, %s3115_s29 }
  0x12   : > { %s3526_s16 = scalar_lea.vmem %s4596_s4, %s2886_s30  ;;  %s2887_s17 = sshll.u32 %s323_s28, 3 }
  0x13   : > { %s3531_s20 = scalar_lea.vmem %s4598_s6, %s2887_s17  ;;  %s3536_s23 = scalar_lea.vmem %s4599_s7, %s2887_s17 }
  0x14   : > { %v394_v0 = vld [vmem:[%s4592_s0] sm:$0xff]  ;;  %v396_v1 = vld [vmem:[%s4592_s0 + $0x8] sm:$0xff]  ;;  %v398_v2 = vld [vmem:[%s4592_s0 + $0x10] sm:$0xff] }
  0x15   : > { %395 = vst [vmem:[%s4597_s5] sm:$0xff] %v394_v0  ;;  %397 = vst [vmem:[%s4597_s5 + $0x8] sm:$0xff] %v396_v1  ;;  %v400_v3 = vld [vmem:[%s4592_s0 + $0x18] sm:$0xff]  ;;  %v402_v4 = vld [vmem:[%s4592_s0 + $0x20] sm:$0xff] }
  0x16   : > { %399 = vst [vmem:[%s4597_s5 + $0x10] sm:$0xff] %v398_v2  ;;  %v404_v5 = vld [vmem:[%s4592_s0 + $0x28] sm:$0xff]  ;;  %401 = vst [vmem:[%s4597_s5 + $0x18] sm:$0xff] %v400_v3  ;;  %v406_v6 = vld [vmem:[%s4592_s0 + $0x30] sm:$0xff] }
  0x17   : > { %403 = vst [vmem:[%s4597_s5 + $0x20] sm:$0xff] %v402_v4  ;;  %405 = vst [vmem:[%s4597_s5 + $0x28] sm:$0xff] %v404_v5  ;;  %v408_v7 = vld [vmem:[%s4592_s0 + $0x38] sm:$0xff]  ;;  %v410_v8 = vld [vmem:[%s4592_s0 + $0x40] sm:$0xff] }
  0x18   : > { %407 = vst [vmem:[%s4597_s5 + $0x30] sm:$0xff] %v406_v6  ;;  %409 = vst [vmem:[%s4597_s5 + $0x38] sm:$0xff] %v408_v7  ;;  %v412_v9 = vld [vmem:[%s4592_s0 + $0x48] sm:$0xff]  ;;  %v414_v10 = vld [vmem:[%s4592_s0 + $0x50] sm:$0xff] }
  0x19   : > { %411 = vst [vmem:[%s4597_s5 + $0x40] sm:$0xff] %v410_v8  ;;  %v416_v11 = vld [vmem:[%s4592_s0 + $0x58] sm:$0xff]  ;;  %413 = vst [vmem:[%s4597_s5 + $0x48] sm:$0xff] %v412_v9  ;;  %v418_v12 = vld [vmem:[%s4592_s0 + $0x60] sm:$0xff] }
  0x1a   : > { %415 = vst [vmem:[%s4597_s5 + $0x50] sm:$0xff] %v414_v10  ;;  %417 = vst [vmem:[%s4597_s5 + $0x58] sm:$0xff] %v416_v11  ;;  %v420_v13 = vld [vmem:[%s4592_s0 + $0x68] sm:$0xff]  ;;  %v422_v14 = vld [vmem:[%s4592_s0 + $0x70] sm:$0xff] }
  0x1b   : > { %419 = vst [vmem:[%s4597_s5 + $0x60] sm:$0xff] %v418_v12  ;;  %421 = vst [vmem:[%s4597_s5 + $0x68] sm:$0xff] %v420_v13  ;;  %v424_v15 = vld [vmem:[%s4592_s0 + $0x78] sm:$0xff] }
  0x1c   : > { %423 = vst [vmem:[%s4597_s5 + $0x70] sm:$0xff] %v422_v14  ;;  %425 = vst [vmem:[%s4597_s5 + $0x78] sm:$0xff] %v424_v15 }
  0x1d   : > { %433 = vsyncadd [#allocation3], 2048 }
  0x1e   : > { %3426 = dma.done.wait [#allocation3], 2048 }
  0x1f   : > { %3427 = vsyncadd [#allocation3], 4294965248 }
  0x20 PF: > { %v3635_v16 = vld [vmem:[%s3521_s13] sm:$0xff]  ;;  %v3638_v17 = vld [vmem:[%s3521_s13 + $0x8] sm:$0xff]  ;;  %v3641_v18 = vld [vmem:[%s3521_s13 + $0x10] sm:$0xff]  ;;  %v4600_v20 = vmov 0  }
  0x21   : > { %4694 = vst [vmem:[#allocation6_spill] sm:$0xff] %v3635_v16  ;;  %4695 = vst [vmem:[#allocation7_spill] sm:$0xff] %v3638_v17  ;;  %v3644_v19 = vld [vmem:[%s3521_s13 + $0x18] sm:$0xff]  ;;  %728 = vmatprep.mubr.bf16.mxu0 %v4600_v20  ;;  %801 = vmatprep.mubr.bf16.mxu1 %v4600_v20  ;;  %v3649_v21 = vld [vmem:[%s3521_s13 + $0x20] sm:$0xff] }
  0x22   : > { %4696 = vst [vmem:[#allocation8_spill] sm:$0xff] %v3641_v18  ;;  %4697 = vst [vmem:[#allocation9_spill] sm:$0xff] %v3644_v19  ;;  %v3652_v22 = vld [vmem:[%s3521_s13 + $0x28] sm:$0xff]  ;;  %v3655_v23 = vld [vmem:[%s3521_s13 + $0x30] sm:$0xff]  ;;  %v4753_v18 = vmov 0  }
  0x23   : > { %4698 = vst [vmem:[#allocation10_spill] sm:$0xff] %v3649_v21  ;;  %4699 = vst [vmem:[#allocation11_spill] sm:$0xff] %v3652_v22  ;;  %v3658_v24 = vld [vmem:[%s3521_s13 + $0x38] sm:$0xff]  ;;  %v3661_v25 = vld [vmem:[%s3521_s13 + $0x40] sm:$0xff] }
  0x24   : > { %4700 = vst [vmem:[#allocation12_spill] sm:$0xff] %v3655_v23  ;;  %4701 = vst [vmem:[#allocation13_spill] sm:$0xff] %v3658_v24  ;;  %v3664_v26 = vld [vmem:[%s3521_s13 + $0x48] sm:$0xff]  ;;  %v3667_v27 = vld [vmem:[%s3521_s13 + $0x50] sm:$0xff]  ;;  %v516_v23 = vlaneseq }
  0x25   : > { %4702 = vst [vmem:[#allocation14_spill] sm:$0xff] %v3661_v25  ;;  %4703 = vst [vmem:[#allocation15_spill] sm:$0xff] %v3664_v26  ;;  %v3670_v28 = vld [vmem:[%s3521_s13 + $0x58] sm:$0xff]  ;;  %v3673_v29 = vld [vmem:[%s3521_s13 + $0x60] sm:$0xff] }
  0x26   : > { %4704 = vst [vmem:[#allocation16_spill] sm:$0xff] %v3667_v27  ;;  %4705 = vst [vmem:[#allocation17_spill] sm:$0xff] %v3670_v28  ;;  %v3676_v30 = vld [vmem:[%s3521_s13 + $0x68] sm:$0xff]  ;;  %v3679_v31 = vld [vmem:[%s3521_s13 + $0x70] sm:$0xff]  ;;  %v517_v26 = vshrl.u32 %v516_v23, 7 }
  0x27   : > { %4706 = vst [vmem:[#allocation18_spill] sm:$0xff] %v3673_v29  ;;  %4707 = vst [vmem:[#allocation19_spill] sm:$0xff] %v3676_v30  ;;  %v3682_v32 = vld [vmem:[%s3521_s13 + $0x78] sm:$0xff]  ;;  %v3685_v33 = vld [vmem:[%s3521_s13 + $0x80] sm:$0xff] }
  0x28   : > { %4708 = vst [vmem:[#allocation20_spill] sm:$0xff] %v3679_v31  ;;  %4709 = vst [vmem:[#allocation21_spill] sm:$0xff] %v3682_v32  ;;  %v3688_v34 = vld [vmem:[%s3521_s13 + $0x88] sm:$0xff]  ;;  %v3691_v35 = vld [vmem:[%s3521_s13 + $0x90] sm:$0xff]  ;;  %v526_v28 = vsub.s32 2, %v517_v26  ;;  %v530_v25 = vsub.s32 3, %v517_v26 }
  0x29   : > { %4710 = vst [vmem:[#allocation22_spill] sm:$0xff] %v3685_v33  ;;  %4711 = vst [vmem:[#allocation23_spill] sm:$0xff] %v3688_v34  ;;  %v3694_v36 = vld [vmem:[%s3521_s13 + $0x98] sm:$0xff]  ;;  %v3697_v37 = vld [vmem:[%s3521_s13 + $0xa0] sm:$0xff] }
  0x2a   : > { %4712 = vst [vmem:[#allocation24_spill] sm:$0xff] %v3691_v35  ;;  %4713 = vst [vmem:[#allocation25_spill] sm:$0xff] %v3694_v36  ;;  %v3700_v38 = vld [vmem:[%s3521_s13 + $0xa8] sm:$0xff]  ;;  %v3703_v39 = vld [vmem:[%s3521_s13 + $0xb0] sm:$0xff] }
  0x2b   : > { %4714 = vst [vmem:[#allocation26_spill] sm:$0xff] %v3697_v37  ;;  %4715 = vst [vmem:[#allocation27_spill] sm:$0xff] %v3700_v38  ;;  %v3706_v40 = vld [vmem:[%s3521_s13 + $0xb8] sm:$0xff]  ;;  %v3709_v41 = vld [vmem:[%s3521_s13 + $0xc0] sm:$0xff] }
  0x2c   : > { %4716 = vst [vmem:[#allocation28_spill] sm:$0xff] %v3703_v39  ;;  %4717 = vst [vmem:[#allocation29_spill] sm:$0xff] %v3706_v40  ;;  %v3712_v42 = vld [vmem:[%s3521_s13 + $0xc8] sm:$0xff]  ;;  %v3715_v43 = vld [vmem:[%s3521_s13 + $0xd0] sm:$0xff] }
  0x2d   : > { %4718 = vst [vmem:[#allocation30_spill] sm:$0xff] %v3709_v41  ;;  %4719 = vst [vmem:[#allocation31_spill] sm:$0xff] %v3712_v42  ;;  %v3718_v44 = vld [vmem:[%s3521_s13 + $0xd8] sm:$0xff]  ;;  %v3721_v45 = vld [vmem:[%s3521_s13 + $0xe0] sm:$0xff] }
  0x2e   : > { %4720 = vst [vmem:[#allocation32_spill] sm:$0xff] %v3715_v43  ;;  %4721 = vst [vmem:[#allocation33_spill] sm:$0xff] %v3718_v44  ;;  %v3724_v46 = vld [vmem:[%s3521_s13 + $0xe8] sm:$0xff]  ;;  %v3727_v47 = vld [vmem:[%s3521_s13 + $0xf0] sm:$0xff] }
  0x2f   : > { %4722 = vst [vmem:[#allocation34_spill] sm:$0xff] %v3721_v45  ;;  %4723 = vst [vmem:[#allocation35_spill] sm:$0xff] %v3724_v46  ;;  %v3730_v48 = vld [vmem:[%s3521_s13 + $0xf8] sm:$0xff]  ;;  %v3733_v49 = vld [vmem:[%s3516_s10 + $0xe4] ss:$16 sps:$4 sm:$0xff]  }
  0x30   : > { %4724 = vst [vmem:[#allocation36_spill] sm:$0xff] %v3727_v47  ;;  %4725 = vst [vmem:[#allocation37_spill] sm:$0xff] %v3730_v48  ;;  %v3736_v50 = vld [vmem:[%s3516_s10 + $0xec] ss:$16 sps:$4 sm:$0xff]   ;;  %v3739_v51 = vld [vmem:[%s3516_s10 + $0xe0] ss:$16 sps:$4 sm:$0xff]   ;;  %696 = vmatprep.subr.bf16.mxu0 %v3733_v49 }
  0x31   : > { %4726 = vst [vmem:[#allocation38_spill] sm:$0xff] %v3733_v49  ;;  %4727 = vst [vmem:[#allocation39_spill] sm:$0xff] %v3736_v50  ;;  %v3743_v52 = vld [vmem:[%s3516_s10 + $0xe8] ss:$16 sps:$4 sm:$0xff]   ;;  %769 = vmatprep.subr.bf16.mxu1 %v3736_v50  ;;  %697 = vmatpush1.bf16.msra.mxu0 %v3739_v51  ;;  %v3748_v53 = vld [vmem:[%s3516_s10 + $0xc4] ss:$16 sps:$4 sm:$0xff]  }
  0x32   : > { %4728 = vst [vmem:[#allocation40_spill] sm:$0xff] %v3739_v51  ;;  %4729 = vst [vmem:[#allocation41_spill] sm:$0xff] %v3743_v52  ;;  %770 = vmatpush1.bf16.msra.mxu1 %v3743_v52  ;;  %v3752_v54 = vld [vmem:[%s3516_s10 + $0xcc] ss:$16 sps:$4 sm:$0xff]   ;;  %v3755_v55 = vld [vmem:[%s3516_s10 + $0xc0] ss:$16 sps:$4 sm:$0xff]   ;;  %698 = vmatprep.subr.bf16.mxu0 %v3748_v53 }
  0x33   : > { %4730 = vst [vmem:[#allocation42_spill] sm:$0xff] %v3748_v53  ;;  %4731 = vst [vmem:[#allocation43_spill] sm:$0xff] %v3752_v54  ;;  %v3758_v56 = vld [vmem:[%s3516_s10 + $0xc8] ss:$16 sps:$4 sm:$0xff]   ;;  %v3762_v57 = vld [vmem:[%s3516_s10 + $0xa4] ss:$16 sps:$4 sm:$0xff]   ;;  %771 = vmatprep.subr.bf16.mxu1 %v3752_v54 }
  0x34   : > { %4732 = vst [vmem:[#allocation44_spill] sm:$0xff] %v3755_v55  ;;  %4733 = vst [vmem:[#allocation45_spill] sm:$0xff] %v3758_v56  ;;  %v3766_v58 = vld [vmem:[%s3516_s10 + $0xac] ss:$16 sps:$4 sm:$0xff]   ;;  %v3770_v59 = vld [vmem:[%s3516_s10 + $0xa0] ss:$16 sps:$4 sm:$0xff]  }
  0x35   : > { %4734 = vst [vmem:[#allocation46_spill] sm:$0xff] %v3762_v57  ;;  %4735 = vst [vmem:[#allocation47_spill] sm:$0xff] %v3766_v58  ;;  %699 = vmatpush1.bf16.msra.mxu0 %v3755_v55  ;;  %v3773_v60 = vld [vmem:[%s3516_s10 + $0xa8] ss:$16 sps:$4 sm:$0xff]   ;;  %v3778_v61 = vld [vmem:[%s3516_s10 + $0x84] ss:$16 sps:$4 sm:$0xff]  }
  0x36   : > { %772 = vmatpush1.bf16.msra.mxu1 %v3758_v56  ;;  %700 = vmatprep.subr.bf16.mxu0 %v3762_v57  ;;  %v3782_v62 = vld [vmem:[%s3516_s10 + $0x8c] ss:$16 sps:$4 sm:$0xff]   ;;  %v3786_v63 = vld [vmem:[%s3516_s10 + $0x80] ss:$16 sps:$4 sm:$0xff]   ;;  %v3791_v0 = vld [vmem:[%s3516_s10 + $0x88] ss:$16 sps:$4 sm:$0xff]  }
  0x37   : > { %773 = vmatprep.subr.bf16.mxu1 %v3766_v58  ;;  %4736 = vst [vmem:[#allocation48_spill] sm:$0xff] %v3791_v0  ;;  %v3794_v1 = vld [vmem:[%s3516_s10 + $0x64] ss:$16 sps:$4 sm:$0xff]   ;;  %v3798_v2 = vld [vmem:[%s3516_s10 + $0x6c] ss:$16 sps:$4 sm:$0xff]  }
  0x38   : > { %4737 = vst [vmem:[#allocation49_spill] sm:$0xff] %v3794_v1  ;;  %4738 = vst [vmem:[#allocation50_spill] sm:$0xff] %v3798_v2  ;;  %v3802_v3 = vld [vmem:[%s3516_s10 + $0x60] ss:$16 sps:$4 sm:$0xff]   ;;  %v3805_v4 = vld [vmem:[%s3516_s10 + $0x68] ss:$16 sps:$4 sm:$0xff]  }
  0x39   : > { %701 = vmatpush1.bf16.msra.mxu0 %v3770_v59  ;;  %4739 = vst [vmem:[#allocation51_spill] sm:$0xff] %v3802_v3  ;;  %4740 = vst [vmem:[#allocation52_spill] sm:$0xff] %v3805_v4  ;;  %v3810_v5 = vld [vmem:[%s3516_s10 + $0x44] ss:$16 sps:$4 sm:$0xff]   ;;  %v3814_v6 = vld [vmem:[%s3516_s10 + $0x4c] ss:$16 sps:$4 sm:$0xff]  }
  0x3a   : > { %774 = vmatpush1.bf16.msra.mxu1 %v3773_v60  ;;  %702 = vmatprep.subr.bf16.mxu0 %v3778_v61  ;;  %4741 = vst [vmem:[#allocation53_spill] sm:$0xff] %v3810_v5  ;;  %4742 = vst [vmem:[#allocation54_spill] sm:$0xff] %v3814_v6  ;;  %v3818_v7 = vld [vmem:[%s3516_s10 + $0x40] ss:$16 sps:$4 sm:$0xff]   ;;  %v3823_v8 = vld [vmem:[%s3516_s10 + $0x48] ss:$16 sps:$4 sm:$0xff]  }
  0x3b   : > { %775 = vmatprep.subr.bf16.mxu1 %v3782_v62  ;;  %4743 = vst [vmem:[#allocation55_spill] sm:$0xff] %v3818_v7  ;;  %4744 = vst [vmem:[#allocation56_spill] sm:$0xff] %v3823_v8  ;;  %v3826_v9 = vld [vmem:[%s3516_s10 + $0x24] ss:$16 sps:$4 sm:$0xff]   ;;  %v3830_v10 = vld [vmem:[%s3516_s10 + $0x2c] ss:$16 sps:$4 sm:$0xff]  }
  0x3c   : > { %4745 = vst [vmem:[#allocation57_spill] sm:$0xff] %v3826_v9  ;;  %4746 = vst [vmem:[#allocation58_spill] sm:$0xff] %v3830_v10  ;;  %v3834_v11 = vld [vmem:[%s3516_s10 + $0x20] ss:$16 sps:$4 sm:$0xff]   ;;  %v3839_v12 = vld [vmem:[%s3516_s10 + $0x28] ss:$16 sps:$4 sm:$0xff]  }
  0x3d   : > { %703 = vmatpush1.bf16.msra.mxu0 %v3786_v63  ;;  %4747 = vst [vmem:[#allocation59_spill] sm:$0xff] %v3834_v11  ;;  %4748 = vst [vmem:[#allocation60_spill] sm:$0xff] %v3839_v12  ;;  %v3842_v13 = vld [vmem:[%s3516_s10 + $0x4] ss:$16 sps:$4 sm:$0xff]   ;;  %v3846_v14 = vld [vmem:[%s3516_s10 + $0xc] ss:$16 sps:$4 sm:$0xff]  }
  0x3e   : > { %776 = vmatpush1.bf16.msra.mxu1 %v3791_v0  ;;  %704 = vmatprep.subr.bf16.mxu0 %v3794_v1  ;;  %4749 = vst [vmem:[#allocation61_spill] sm:$0xff] %v3842_v13  ;;  %4750 = vst [vmem:[#allocation62_spill] sm:$0xff] %v3846_v14  ;;  %v3850_v15 = vld [vmem:[%s3516_s10] ss:$16 sps:$4 sm:$0xff]   ;;  %v504_v17 = vld [vmem:[%s4597_s5 + $0x8] sm:$0xff] }
  0x3f   : > { %777 = vmatprep.subr.bf16.mxu1 %v3798_v2  ;;  %4751 = vst [vmem:[#allocation63_spill] sm:$0xff] %v3850_v15  ;;  %v503_v20 = vld [vmem:[%s4597_s5] sm:$0xff]  ;;  %v3861_v19 = vld [vmem:[%s3516_s10 + $0x8] ss:$16 sps:$4 sm:$0xff]   ;;  %v505_v22 = vld [vmem:[%s4597_s5 + $0x10] sm:$0xff] }
  0x40   : > { %4752 = vst [vmem:[#allocation64_spill] sm:$0xff] %v3861_v19  ;;  %v511_v16 = vpack.c.bf16 %v504_v17, %v503_v20  ;;  %v506_v24 = vld [vmem:[%s4597_s5 + $0x18] sm:$0xff]  ;;  %v508_v17 = vld [vmem:[%s4597_s5 + $0x28] sm:$0xff] }
  0x41   : > { %705 = vmatpush1.bf16.msra.mxu0 %v3802_v3  ;;  %v512_v21 = vpack.c.bf16 %v506_v24, %v505_v22  ;;  %v510_v22 = vld [vmem:[%s4597_s5 + $0x38] sm:$0xff] }
  0x42   : > { %778 = vmatpush1.bf16.msra.mxu1 %v3805_v4  ;;  %706 = vmatprep.subr.bf16.mxu0 %v3810_v5 }
  0x43   : > { %779 = vmatprep.subr.bf16.mxu1 %v3814_v6 }
  0x45   : > { %707 = vmatpush1.bf16.msra.mxu0 %v3818_v7 }
  0x46   : > { %780 = vmatpush1.bf16.msra.mxu1 %v3823_v8  ;;  %708 = vmatprep.subr.bf16.mxu0 %v3826_v9 }
  0x47   : > { %781 = vmatprep.subr.bf16.mxu1 %v3830_v10 }
  0x49   : > { %709 = vmatpush1.bf16.msra.mxu0 %v3834_v11 }
  0x4a   : > { %782 = vmatpush1.bf16.msra.mxu1 %v3839_v12  ;;  %710 = vmatprep.subr.bf16.mxu0 %v3842_v13 }
  0x4b   : > { %783 = vmatprep.subr.bf16.mxu1 %v3846_v14 }
  0x4d   : > { %711 = vmatpush1.bf16.msra.mxu0 %v3850_v15 }
  0x4e   : > { %784 = vmatpush1.bf16.msra.mxu1 %v3861_v19 }
  0x50   : > { %729 = vmatmul.mubr.bf16.vlgmr.msra.gmra.mxu0 %v511_v16 }
  0x51   : > { %802 = vmatmul.mubr.bf16.vlgmr.msra.gmra.mxu1 %v511_v16  ;;  %738 = vmatprep.mubr.bf16.mxu0 %v4753_v18  ;;  %v507_v16 = vld [vmem:[%s4597_s5 + $0x20] sm:$0xff] }
  0x52   : > { %811 = vmatprep.mubr.bf16.mxu1 %v4753_v18  ;;  %v513_v20 = vpack.c.bf16 %v508_v17, %v507_v16  ;;  %v518_v16 = vsub.s32 0, %v517_v26  ;;  %v522_v17 = vsub.s32 1, %v517_v26 }
  0x58   : > { %739 = vmatmul.mubr.bf16.gmra.mxu0 %v512_v21 }
  0x59   : > { %812 = vmatmul.mubr.bf16.gmra.mxu1 %v512_v21  ;;  %748 = vmatprep.mubr.bf16.mxu0 %v4753_v18  ;;  %v509_v21 = vld [vmem:[%s4597_s5 + $0x30] sm:$0xff] }
  0x5a   : > { %821 = vmatprep.mubr.bf16.mxu1 %v4753_v18  ;;  %v514_v24 = vpack.c.bf16 %v510_v22, %v509_v21 }
  0x60   : > { %749 = vmatmul.mubr.bf16.gmra.mxu0 %v513_v20 }
  0x61   : > { %822 = vmatmul.mubr.bf16.gmra.mxu1 %v513_v20  ;;  %758 = vmatprep.mubr.bf16.mxu0 %v4753_v18  ;;  %v502_v20 = vld [vmem:[%s3526_s16] sm:$0xf]  ;;  %s3935_s16 = smov 0  }
  0x62   : > { %831 = vmatprep.mubr.bf16.mxu1 %v4753_v18  ;;  %v3891_v27 = vrot.slane %v502_v20, %v518_v16  ;;  %v3893_v30 = vrot.slane %v502_v20, %v522_v17  ;;  %v3895_v29 = vrot.slane %v502_v20, %v526_v28  ;;  %v3897_v31 = vrot.slane %v502_v20, %v530_v25 }
  0x64   : > { %4754 = vst [vmem:[#allocation65_spill] sm:$0xff] %v3891_v27  ;;  %4755 = vst [vmem:[#allocation66_spill] sm:$0xff] %v3893_v30 }
  0x65   : > { %4756 = vst [vmem:[#allocation67_spill] sm:$0xff] %v3895_v29  ;;  %4757 = vst [vmem:[#allocation68_spill] sm:$0xff] %v3897_v31 }
  0x68   : > { %759 = vmatmul.mubr.bf16.gmra.mxu0 %v514_v24 }
  0x69   : > { %832 = vmatmul.mubr.bf16.gmra.mxu1 %v514_v24 }
 0x110   : > { %v730_v32 = vpop.f32.mrf.mxu0 }
 0x111   : > { %v803_v18 = vpop.f32.mrf.mxu1  ;;  %v731_v22 = vadd.f32 %v730_v32, %v3891_v27 }
 0x112   : > { %v732_v21 = vpop.f32.mrf.mxu0  ;;  %v804_v34 = vadd.f32 %v803_v18, %v3895_v29 }
 0x113   : > { %v733_v23 = vadd.f32 %v732_v21, %v3893_v30  ;;  %v805_v24 = vpop.f32.mrf.mxu1 }
 0x114   : > { %v806_v26 = vadd.f32 %v805_v24, %v3897_v31  ;;  %v734_v16 = vpop.f32.mrf.mxu0 }
 0x115   : > { %v3117_v36 = vpack.c.bf16 %v733_v23, %v731_v22  ;;  %v807_v17 = vpop.f32.mrf.mxu1  ;;  %v735_v25 = vadd.f32 %v734_v16, %v3891_v27 }
 0x116   : > { %v3118_v33 = vpack.c.bf16 %v806_v26, %v804_v34  ;;  %v736_v35 = vpop.f32.mrf.mxu0  ;;  %v808_v32 = vadd.f32 %v807_v17, %v3895_v29 }
 0x117   : > { %970 = vst [vmem:[#allocation2] sm:$0xff] %v3117_v36  ;;  %v737_v28 = vadd.f32 %v736_v35, %v3893_v30  ;;  %v809_v20 = vpop.f32.mrf.mxu1 }
 0x118   : > { %971 = vst [vmem:[#allocation2 + $0x8] sm:$0xff] %v3118_v33  ;;  %v810_v21 = vadd.f32 %v809_v20, %v3897_v31  ;;  %v740_v38 = vpop.f32.mrf.mxu0 }
 0x119   : > { %v3119_v18 = vpack.c.bf16 %v737_v28, %v735_v25  ;;  %v813_v40 = vpop.f32.mrf.mxu1  ;;  %v741_v34 = vadd.f32 %v740_v38, %v3891_v27 }
 0x11a   : > { %v3120_v24 = vpack.c.bf16 %v810_v21, %v808_v32  ;;  %v742_v37 = vpop.f32.mrf.mxu0  ;;  %v814_v35 = vadd.f32 %v813_v40, %v3895_v29 }
 0x11b   : > { %972 = vst [vmem:[#allocation2 + $0x10] sm:$0xff] %v3119_v18  ;;  %v743_v36 = vadd.f32 %v742_v37, %v3893_v30  ;;  %v815_v22 = vpop.f32.mrf.mxu1 }
 0x11c   : > { %973 = vst [vmem:[#allocation2 + $0x18] sm:$0xff] %v3120_v24  ;;  %v816_v33 = vadd.f32 %v815_v22, %v3897_v31  ;;  %v744_v23 = vpop.f32.mrf.mxu0 }
 0x11d   : > { %v3121_v26 = vpack.c.bf16 %v743_v36, %v741_v34  ;;  %v817_v16 = vpop.f32.mrf.mxu1  ;;  %v745_v25 = vadd.f32 %v744_v23, %v3891_v27 }
 0x11e   : > { %v3122_v17 = vpack.c.bf16 %v816_v33, %v814_v35  ;;  %v746_v20 = vpop.f32.mrf.mxu0  ;;  %v818_v37 = vadd.f32 %v817_v16, %v3895_v29 }
 0x11f   : > { %974 = vst [vmem:[#allocation2 + $0x20] sm:$0xff] %v3121_v26  ;;  %v747_v28 = vadd.f32 %v746_v20, %v3893_v30  ;;  %v819_v32 = vpop.f32.mrf.mxu1 }
 0x120   : > { %975 = vst [vmem:[#allocation2 + $0x28] sm:$0xff] %v3122_v17  ;;  %v820_v38 = vadd.f32 %v819_v32, %v3897_v31  ;;  %v750_v21 = vpop.f32.mrf.mxu0 }
 0x121   : > { %v3123_v40 = vpack.c.bf16 %v747_v28, %v745_v25  ;;  %v823_v18 = vpop.f32.mrf.mxu1  ;;  %v751_v34 = vadd.f32 %v750_v21, %v3891_v27 }
 0x122   : > { %v3124_v24 = vpack.c.bf16 %v820_v38, %v818_v37  ;;  %v752_v22 = vpop.f32.mrf.mxu0  ;;  %v824_v33 = vadd.f32 %v823_v18, %v3895_v29 }
 0x123   : > { %976 = vst [vmem:[#allocation2 + $0x30] sm:$0xff] %v3123_v40  ;;  %v753_v36 = vadd.f32 %v752_v22, %v3893_v30  ;;  %v825_v35 = vpop.f32.mrf.mxu1 }
 0x124   : > { %977 = vst [vmem:[#allocation2 + $0x38] sm:$0xff] %v3124_v24  ;;  %v826_v23 = vadd.f32 %v825_v35, %v3897_v31  ;;  %v754_v26 = vpop.f32.mrf.mxu0 }
 0x125   : > { %v3125_v16 = vpack.c.bf16 %v753_v36, %v751_v34  ;;  %v827_v17 = vpop.f32.mrf.mxu1  ;;  %v755_v25 = vadd.f32 %v754_v26, %v3891_v27 }
 0x126   : > { %v3126_v20 = vpack.c.bf16 %v826_v23, %v824_v33  ;;  %v756_v32 = vpop.f32.mrf.mxu0  ;;  %v828_v38 = vadd.f32 %v827_v17, %v3895_v29 }
 0x127   : > { %978 = vst [vmem:[#allocation2 + $0x40] sm:$0xff] %v3125_v16  ;;  %v757_v28 = vadd.f32 %v756_v32, %v3893_v30  ;;  %v829_v37 = vpop.f32.mrf.mxu1 }
 0x128   : > { %979 = vst [vmem:[#allocation2 + $0x48] sm:$0xff] %v3126_v20  ;;  %v830_v21 = vadd.f32 %v829_v37, %v3897_v31  ;;  %v760_v40 = vpop.f32.mrf.mxu0 }
 0x129   : > { %v3127_v18 = vpack.c.bf16 %v757_v28, %v755_v25  ;;  %v833_v24 = vpop.f32.mrf.mxu1  ;;  %v761_v34 = vadd.f32 %v760_v40, %v3891_v27 }
 0x12a   : > { %v3128_v22 = vpack.c.bf16 %v830_v21, %v828_v38  ;;  %v762_v35 = vpop.f32.mrf.mxu0  ;;  %v834_v23 = vadd.f32 %v833_v24, %v3895_v29 }
 0x12b   : > { %980 = vst [vmem:[#allocation2 + $0x50] sm:$0xff] %v3127_v18  ;;  %v763_v36 = vadd.f32 %v762_v35, %v3893_v30  ;;  %v835_v33 = vpop.f32.mrf.mxu1  ;;  %v3933_v35 = vmov 0.0  }
 0x12c   : > { %981 = vst [vmem:[#allocation2 + $0x58] sm:$0xff] %v3128_v22  ;;  %v836_v26 = vadd.f32 %v835_v33, %v3897_v31  ;;  %v764_v16 = vpop.f32.mrf.mxu0  ;;  %v3931_v22 = vmov 0.0  }
 0x12d   : > { %v3129_v17 = vpack.c.bf16 %v763_v36, %v761_v34  ;;  %v837_v20 = vpop.f32.mrf.mxu1  ;;  %v765_v25 = vadd.f32 %v764_v16, %v3891_v27 }
 0x12e   : > { %v3130_v32 = vpack.c.bf16 %v836_v26, %v834_v23  ;;  %v766_v37 = vpop.f32.mrf.mxu0  ;;  %v838_v21 = vadd.f32 %v837_v20, %v3895_v29 }
 0x12f   : > { %982 = vst [vmem:[#allocation2 + $0x60] sm:$0xff] %v3129_v17  ;;  %v767_v28 = vadd.f32 %v766_v37, %v3893_v30  ;;  %v839_v38 = vpop.f32.mrf.mxu1 }
 0x130   : > { %983 = vst [vmem:[#allocation2 + $0x68] sm:$0xff] %v3130_v32  ;;  %v840_v40 = vadd.f32 %v839_v38, %v3897_v31 }
 0x131   : > { %v3131_v18 = vpack.c.bf16 %v767_v28, %v765_v25 }
 0x132   : > { %v3132_v24 = vpack.c.bf16 %v840_v40, %v838_v21 }
 0x133   : > { %984 = vst [vmem:[#allocation2 + $0x70] sm:$0xff] %v3131_v18 }
 0x134   : > { %985 = vst [vmem:[#allocation2 + $0x78] sm:$0xff] %v3132_v24 }
 0x135 LB: >> { %v4758_v48 = vld [vmem:[#allocation37_spill] sm:$0xff]  ;;  %v4759_v47 = vld [vmem:[#allocation36_spill] sm:$0xff]  ;;  %v4760_v46 = vld [vmem:[#allocation35_spill] sm:$0xff]  ;;  %s994_s30 = sadd.s32 1, %s3450_s16   ;;  %v3442_v22 = vphi %v3931_v22, %v4823_v22   ;;  %s3450_s16 = sphi %s3935_s16, %s4825_s16   ;;  %v3446_v35 = vphi %v3933_v35, %v4824_v35  }
 0x136   : >> { %v4761_v45 = vld [vmem:[#allocation34_spill] sm:$0xff]  ;;  %v4762_v44 = vld [vmem:[#allocation33_spill] sm:$0xff]  ;;  %v4763_v43 = vld [vmem:[#allocation32_spill] sm:$0xff]  ;;  %p3949_p6 = scmp.ge.s32.totalorder %s994_s30, 2 }
 0x137   : >> { %v4764_v42 = vld [vmem:[#allocation31_spill] sm:$0xff]  ;;  %v4765_v41 = vld [vmem:[#allocation30_spill] sm:$0xff]  ;;  %v4766_v39 = vld [vmem:[#allocation28_spill] sm:$0xff]  ;;  %s2939_s28 = sshll.u32 (!%p3949_p6), %s3450_s16, 6  ;;  %s2964_s15 = sshll.u32 (!%p3949_p6), %s3450_s16, 7 }
 0x138   : >> { %v4767_v31 = vld [vmem:[#allocation68_spill] sm:$0xff]  ;;  %v4768_v30 = vld [vmem:[#allocation66_spill] sm:$0xff]  ;;  %v4769_v29 = vld [vmem:[#allocation67_spill] sm:$0xff]  ;;  %998 = sbr.rel (%p3949_p6) target bundleno = 578 (0x242), region = 85  ;;  %s2681_s14 = scalar_lea.vmem (!%p3949_p6), %s4597_s5, %s2939_s28 }
 0x139   : >> { %v4770_v27 = vld [vmem:[#allocation65_spill] sm:$0xff]  ;;  %s3996_s17 = scalar_lea.vmem (!%p3949_p6), [#allocation2], %s2964_s15 }
 0x13d   : >> { %v4772_v49 = vld [vmem:[#allocation38_spill] sm:$0xff]  ;;  %v4773_v50 = vld [vmem:[#allocation39_spill] sm:$0xff]  ;;  %v4774_v51 = vld [vmem:[#allocation40_spill] sm:$0xff]  ;;  %v3453_v34 = vmov 0  }
 0x13e   : >> { %1014 = vmatprep.subr.bf16.mxu0 %v4772_v49  ;;  %1087 = vmatprep.subr.bf16.mxu1 %v4773_v50  ;;  %v4775_v52 = vld [vmem:[#allocation41_spill] sm:$0xff]  ;;  %v4776_v53 = vld [vmem:[#allocation42_spill] sm:$0xff]  ;;  %v4777_v54 = vld [vmem:[#allocation43_spill] sm:$0xff] }
 0x13f   : >> { %1015 = vmatpush1.bf16.msra.mxu0 %v4774_v51  ;;  %1088 = vmatpush1.bf16.msra.mxu1 %v4775_v52  ;;  %v4778_v55 = vld [vmem:[#allocation44_spill] sm:$0xff]  ;;  %v4779_v56 = vld [vmem:[#allocation45_spill] sm:$0xff]  ;;  %v4780_v57 = vld [vmem:[#allocation46_spill] sm:$0xff] }
 0x140   : >> { %1016 = vmatprep.subr.bf16.mxu0 %v4776_v53  ;;  %1089 = vmatprep.subr.bf16.mxu1 %v4777_v54  ;;  %v4781_v58 = vld [vmem:[#allocation47_spill] sm:$0xff]  ;;  %v4782_v0 = vld [vmem:[#allocation48_spill] sm:$0xff]  ;;  %v4783_v1 = vld [vmem:[#allocation49_spill] sm:$0xff] }
 0x141   : >> { %1046 = vmatprep.mubr.bf16.mxu0 %v3453_v34  ;;  %1119 = vmatprep.mubr.bf16.mxu1 %v3453_v34  ;;  %v4784_v2 = vld [vmem:[#allocation50_spill] sm:$0xff]  ;;  %v4785_v3 = vld [vmem:[#allocation51_spill] sm:$0xff]  ;;  %v4786_v4 = vld [vmem:[#allocation52_spill] sm:$0xff] }
 0x142   : >> { %v4787_v5 = vld [vmem:[#allocation53_spill] sm:$0xff]  ;;  %v4788_v6 = vld [vmem:[#allocation54_spill] sm:$0xff]  ;;  %v4789_v7 = vld [vmem:[#allocation55_spill] sm:$0xff] }
 0x143   : >> { %1017 = vmatpush1.bf16.msra.mxu0 %v4778_v55  ;;  %1090 = vmatpush1.bf16.msra.mxu1 %v4779_v56  ;;  %v4790_v8 = vld [vmem:[#allocation56_spill] sm:$0xff]  ;;  %v4791_v9 = vld [vmem:[#allocation57_spill] sm:$0xff]  ;;  %v4792_v10 = vld [vmem:[#allocation58_spill] sm:$0xff] }
 0x144   : >> { %1018 = vmatprep.subr.bf16.mxu0 %v4780_v57  ;;  %1091 = vmatprep.subr.bf16.mxu1 %v4781_v58  ;;  %v4793_v11 = vld [vmem:[#allocation59_spill] sm:$0xff]  ;;  %v4794_v12 = vld [vmem:[#allocation60_spill] sm:$0xff]  ;;  %v2940_v36 = vld [vmem:[%s2681_s14 + $0x40] sm:$0xff] }
 0x145   : >> { %v2941_v33 = vld [vmem:[%s2681_s14 + $0x48] sm:$0xff]  ;;  %v4795_v13 = vld [vmem:[#allocation61_spill] sm:$0xff]  ;;  %v4796_v14 = vld [vmem:[#allocation62_spill] sm:$0xff] }
 0x146   : >> { %v1010_v23 = vpack.c.bf16 %v2941_v33, %v2940_v36  ;;  %v4797_v15 = vld [vmem:[#allocation63_spill] sm:$0xff]  ;;  %v4798_v19 = vld [vmem:[#allocation64_spill] sm:$0xff]  ;;  %v2943_v16 = vld [vmem:[%s2681_s14 + $0x58] sm:$0xff] }
 0x147   : >> { %1019 = vmatpush1.bf16.msra.mxu0 %v3770_v59  ;;  %1092 = vmatpush1.bf16.msra.mxu1 %v3773_v60  ;;  %v2942_v26 = vld [vmem:[%s2681_s14 + $0x50] sm:$0xff]  ;;  %v2944_v20 = vld [vmem:[%s2681_s14 + $0x60] sm:$0xff]  ;;  %v2945_v32 = vld [vmem:[%s2681_s14 + $0x68] sm:$0xff] }
 0x148   : >> { %1020 = vmatprep.subr.bf16.mxu0 %v3778_v61  ;;  %1093 = vmatprep.subr.bf16.mxu1 %v3782_v62  ;;  %v1011_v17 = vpack.c.bf16 %v2943_v16, %v2942_v26  ;;  %v1012_v37 = vpack.c.bf16 %v2945_v32, %v2944_v20  ;;  %v2946_v25 = vld [vmem:[%s2681_s14 + $0x70] sm:$0xff]  ;;  %v2947_v28 = vld [vmem:[%s2681_s14 + $0x78] sm:$0xff] }
 0x149   : >> { %v1013_v38 = vpack.c.bf16 %v2947_v28, %v2946_v25 }
 0x14b   : >> { %1021 = vmatpush1.bf16.msra.mxu0 %v3786_v63  ;;  %1094 = vmatpush1.bf16.msra.mxu1 %v4782_v0 }
 0x14c   : >> { %1022 = vmatprep.subr.bf16.mxu0 %v4783_v1  ;;  %1095 = vmatprep.subr.bf16.mxu1 %v4784_v2 }
 0x14f   : >> { %1023 = vmatpush1.bf16.msra.mxu0 %v4785_v3  ;;  %1096 = vmatpush1.bf16.msra.mxu1 %v4786_v4 }
 0x150   : >> { %1024 = vmatprep.subr.bf16.mxu0 %v4787_v5  ;;  %1097 = vmatprep.subr.bf16.mxu1 %v4788_v6 }
 0x153   : >> { %1025 = vmatpush1.bf16.msra.mxu0 %v4789_v7  ;;  %1098 = vmatpush1.bf16.msra.mxu1 %v4790_v8 }
 0x154   : >> { %1026 = vmatprep.subr.bf16.mxu0 %v4791_v9  ;;  %1099 = vmatprep.subr.bf16.mxu1 %v4792_v10 }
 0x157   : >> { %1027 = vmatpush1.bf16.msra.mxu0 %v4793_v11  ;;  %1100 = vmatpush1.bf16.msra.mxu1 %v4794_v12 }
 0x158   : >> { %1028 = vmatprep.subr.bf16.mxu0 %v4795_v13  ;;  %1101 = vmatprep.subr.bf16.mxu1 %v4796_v14 }
 0x15b   : >> { %1029 = vmatpush1.bf16.msra.mxu0 %v4797_v15  ;;  %1102 = vmatpush1.bf16.msra.mxu1 %v4798_v19 }
 0x15e   : >> { %1047 = vmatmul.mubr.bf16.vlgmr.msra.gmra.mxu0 %v1010_v23  ;;  %1120 = vmatmul.mubr.bf16.vlgmr.msra.gmra.mxu1 %v1010_v23 }
 0x15f   : >> { %1056 = vmatprep.mubr.bf16.mxu0 %v3453_v34  ;;  %1129 = vmatprep.mubr.bf16.mxu1 %v3453_v34 }
 0x166   : >> { %1057 = vmatmul.mubr.bf16.gmra.mxu0 %v1011_v17  ;;  %1130 = vmatmul.mubr.bf16.gmra.mxu1 %v1011_v17 }
 0x167   : >> { %1066 = vmatprep.mubr.bf16.mxu0 %v3453_v34  ;;  %1139 = vmatprep.mubr.bf16.mxu1 %v3453_v34 }
 0x16e   : >> { %1067 = vmatmul.mubr.bf16.gmra.mxu0 %v1012_v37  ;;  %1140 = vmatmul.mubr.bf16.gmra.mxu1 %v1012_v37 }
 0x16f   : >> { %1076 = vmatprep.mubr.bf16.mxu0 %v3453_v34  ;;  %1149 = vmatprep.mubr.bf16.mxu1 %v3453_v34 }
 0x176   : >> { %1077 = vmatmul.mubr.bf16.gmra.mxu0 %v1013_v38  ;;  %1150 = vmatmul.mubr.bf16.gmra.mxu1 %v1013_v38 }
 0x21e   : >> { %v1048_v21 = vpop.f32.mrf.mxu0  ;;  %v1121_v40 = vpop.f32.mrf.mxu1 }
 0x21f   : >> { %v1049_v36 = vadd.f32 %v1048_v21, %v4770_v27  ;;  %v1122_v33 = vadd.f32 %v1121_v40, %v4769_v29 }
 0x220   : >> { %v1050_v18 = vpop.f32.mrf.mxu0  ;;  %v1123_v24 = vpop.f32.mrf.mxu1 }
 0x221   : >> { %v1051_v23 = vadd.f32 %v1050_v18, %v4768_v30  ;;  %v1124_v26 = vadd.f32 %v1123_v24, %v4767_v31 }
 0x222   : >> { %v1052_v16 = vpop.f32.mrf.mxu0  ;;  %v1125_v34 = vpop.f32.mrf.mxu1 }
 0x223   : >> { %v3133_v17 = vpack.c.bf16 %v1051_v23, %v1049_v36  ;;  %v3134_v20 = vpack.c.bf16 %v1124_v26, %v1122_v33  ;;  %v1053_v25 = vadd.f32 %v1052_v16, %v4770_v27  ;;  %v1126_v28 = vadd.f32 %v1125_v34, %v4769_v29 }
 0x224   : >> { %v1054_v32 = vpop.f32.mrf.mxu0  ;;  %v1127_v37 = vpop.f32.mrf.mxu1 }
 0x225   : >> { %2965 = vst [vmem:[%s3996_s17 + $0x80] sm:$0xff] %v3133_v17  ;;  %2966 = vst [vmem:[%s3996_s17 + $0x88] sm:$0xff] %v3134_v20  ;;  %v1055_v38 = vadd.f32 %v1054_v32, %v4768_v30  ;;  %v1128_v21 = vadd.f32 %v1127_v37, %v4767_v31 }
 0x226   : >> { %v1058_v40 = vpop.f32.mrf.mxu0  ;;  %v1131_v18 = vpop.f32.mrf.mxu1 }
 0x227   : >> { %v3135_v24 = vpack.c.bf16 %v1055_v38, %v1053_v25  ;;  %v3136_v36 = vpack.c.bf16 %v1128_v21, %v1126_v28  ;;  %v1059_v26 = vadd.f32 %v1058_v40, %v4770_v27  ;;  %v1132_v16 = vadd.f32 %v1131_v18, %v4769_v29 }
 0x228   : >> { %v1060_v33 = vpop.f32.mrf.mxu0  ;;  %v1133_v23 = vpop.f32.mrf.mxu1 }
 0x229   : >> { %2967 = vst [vmem:[%s3996_s17 + $0x90] sm:$0xff] %v3135_v24  ;;  %2968 = vst [vmem:[%s3996_s17 + $0x98] sm:$0xff] %v3136_v36  ;;  %v1061_v34 = vadd.f32 %v1060_v33, %v4768_v30  ;;  %v1134_v17 = vadd.f32 %v1133_v23, %v4767_v31 }
 0x22a   : >> { %v1062_v20 = vpop.f32.mrf.mxu0  ;;  %v1135_v32 = vpop.f32.mrf.mxu1 }
 0x22b   : >> { %v3137_v37 = vpack.c.bf16 %v1061_v34, %v1059_v26  ;;  %v3138_v25 = vpack.c.bf16 %v1134_v17, %v1132_v16  ;;  %v1063_v21 = vadd.f32 %v1062_v20, %v4770_v27  ;;  %v1136_v40 = vadd.f32 %v1135_v32, %v4769_v29 }
 0x22c   : >> { %v1064_v28 = vpop.f32.mrf.mxu0  ;;  %v1137_v38 = vpop.f32.mrf.mxu1 }
 0x22d   : >> { %2969 = vst [vmem:[%s3996_s17 + $0xa0] sm:$0xff] %v3137_v37  ;;  %2970 = vst [vmem:[%s3996_s17 + $0xa8] sm:$0xff] %v3138_v25  ;;  %v1065_v18 = vadd.f32 %v1064_v28, %v4768_v30  ;;  %v1138_v24 = vadd.f32 %v1137_v38, %v4767_v31 }
 0x22e   : >> { %v1068_v36 = vpop.f32.mrf.mxu0  ;;  %v1141_v33 = vpop.f32.mrf.mxu1 }
 0x22f   : >> { %v3139_v23 = vpack.c.bf16 %v1065_v18, %v1063_v21  ;;  %v3140_v26 = vpack.c.bf16 %v1138_v24, %v1136_v40  ;;  %v1069_v17 = vadd.f32 %v1068_v36, %v4770_v27  ;;  %v1142_v20 = vadd.f32 %v1141_v33, %v4769_v29 }
 0x230   : >> { %v1070_v16 = vpop.f32.mrf.mxu0  ;;  %v1143_v34 = vpop.f32.mrf.mxu1 }
 0x231   : >> { %2971 = vst [vmem:[%s3996_s17 + $0xb0] sm:$0xff] %v3139_v23  ;;  %2972 = vst [vmem:[%s3996_s17 + $0xb8] sm:$0xff] %v3140_v26  ;;  %v1071_v32 = vadd.f32 %v1070_v16, %v4768_v30  ;;  %v1144_v37 = vadd.f32 %v1143_v34, %v4767_v31 }
 0x232   : >> { %v1072_v25 = vpop.f32.mrf.mxu0  ;;  %v1145_v28 = vpop.f32.mrf.mxu1 }
 0x233   : >> { %v3141_v38 = vpack.c.bf16 %v1071_v32, %v1069_v17  ;;  %v3142_v21 = vpack.c.bf16 %v1144_v37, %v1142_v20  ;;  %v1073_v24 = vadd.f32 %v1072_v25, %v4770_v27  ;;  %v1146_v36 = vadd.f32 %v1145_v28, %v4769_v29 }
 0x234   : >> { %v1074_v40 = vpop.f32.mrf.mxu0  ;;  %v1147_v18 = vpop.f32.mrf.mxu1 }
 0x235   : >> { %2973 = vst [vmem:[%s3996_s17 + $0xc0] sm:$0xff] %v3141_v38  ;;  %2974 = vst [vmem:[%s3996_s17 + $0xc8] sm:$0xff] %v3142_v21  ;;  %v1075_v33 = vadd.f32 %v1074_v40, %v4768_v30  ;;  %v1148_v23 = vadd.f32 %v1147_v18, %v4767_v31 }
 0x236   : >> { %v1078_v26 = vpop.f32.mrf.mxu0  ;;  %v1151_v16 = vpop.f32.mrf.mxu1 }
 0x237   : >> { %v3143_v34 = vpack.c.bf16 %v1075_v33, %v1073_v24  ;;  %v3144_v17 = vpack.c.bf16 %v1148_v23, %v1146_v36  ;;  %v1079_v37 = vadd.f32 %v1078_v26, %v4770_v27  ;;  %v1152_v25 = vadd.f32 %v1151_v16, %v4769_v29 }
 0x238   : >> { %v1080_v20 = vpop.f32.mrf.mxu0  ;;  %v1153_v32 = vpop.f32.mrf.mxu1 }
 0x239   : >> { %2975 = vst [vmem:[%s3996_s17 + $0xd0] sm:$0xff] %v3143_v34  ;;  %2976 = vst [vmem:[%s3996_s17 + $0xd8] sm:$0xff] %v3144_v17  ;;  %v1081_v28 = vadd.f32 %v1080_v20, %v4768_v30  ;;  %v1154_v38 = vadd.f32 %v1153_v32, %v4767_v31 }
 0x23a   : >> { %v1082_v21 = vpop.f32.mrf.mxu0  ;;  %v1155_v40 = vpop.f32.mrf.mxu1 }
 0x23b   : >> { %v3145_v18 = vpack.c.bf16 %v1081_v28, %v1079_v37  ;;  %v3146_v24 = vpack.c.bf16 %v1154_v38, %v1152_v25  ;;  %v1083_v23 = vadd.f32 %v1082_v21, %v4770_v27  ;;  %v1156_v26 = vadd.f32 %v1155_v40, %v4769_v29 }
 0x23c   : >> { %v1084_v36 = vpop.f32.mrf.mxu0  ;;  %v1157_v33 = vpop.f32.mrf.mxu1 }
 0x23d   : >> { %2977 = vst [vmem:[%s3996_s17 + $0xe0] sm:$0xff] %v3145_v18  ;;  %2978 = vst [vmem:[%s3996_s17 + $0xe8] sm:$0xff] %v3146_v24  ;;  %v1085_v16 = vadd.f32 %v1084_v36, %v4768_v30  ;;  %v1158_v34 = vadd.f32 %v1157_v33, %v4767_v31 }
 0x23f   : >> { %v3147_v17 = vpack.c.bf16 %v1085_v16, %v1083_v23  ;;  %v3148_v20 = vpack.c.bf16 %v1158_v34, %v1156_v26 }
 0x241   : >> { %2979 = vst [vmem:[%s3996_s17 + $0xf0] sm:$0xff] %v3147_v17  ;;  %2980 = vst [vmem:[%s3996_s17 + $0xf8] sm:$0xff] %v3148_v20 }
 0x242 PF: >> { %v4044_v32 = vcombine.high %v4761_v45, %v4759_v47  ;;  %v4048_v37 = vcombine.low %v4761_v45, %v4759_v47  ;;  %v4052_v25 = vcombine.high %v4765_v41, %v4763_v43  ;;  %v4056_v28 = vcombine.high %v4760_v46, %v4758_v48  ;;  %s3151_s24 = sshll.u32 %s3450_s16, 6  ;;  %v4799_v18 = vld [vmem:[#allocation26_spill] sm:$0xff]  ;;  %v4800_v33 = vld [vmem:[#allocation29_spill] sm:$0xff]  ;;  %v4801_v23 = vld [vmem:[#allocation27_spill] sm:$0xff]  ;;  %s3150_s21 = sshll.u32 %s3450_s16, 7 }
 0x243   : >> { %v4061_v38 = vcombine.low %v4760_v46, %v4758_v48  ;;  %v4065_v21 = vcombine.high %v4764_v42, %v4762_v44  ;;  %v4071_v40 = vcombine.low %v4765_v41, %v4763_v43  ;;  %v4077_v24 = vcombine.high %v4799_v18, %v4766_v39  ;;  %s4094_s19 = scalar_lea.vmem %s4593_s1, %s3151_s24  ;;  %v4802_v17 = vld [vmem:[#allocation24_spill] sm:$0xff]  ;;  %v4803_v20 = vld [vmem:[#allocation22_spill] sm:$0xff]  ;;  %v4804_v2 = vld [vmem:[#allocation25_spill] sm:$0xff]  ;;  %s4257_s22 = scalar_lea.vmem [#allocation2], %s3150_s21 }
 0x244   : >> { %1478 = vmatprep.subr.bf16.mxu0 %v4044_v32  ;;  %1519 = vmatprep.subr.bf16.mxu1 %v4056_v28  ;;  %v4082_v36 = vcombine.low %v4764_v42, %v4762_v44  ;;  %v4087_v26 = vcombine.high %v4801_v23, %v4800_v33  ;;  %v4627_v16 = vmov 0   ;;  %v4100_v34 = vcombine.low %v4799_v18, %v4766_v39  ;;  %v4805_v3 = vld [vmem:[#allocation23_spill] sm:$0xff]  ;;  %v4807_v7 = vld [vmem:[#allocation20_spill] sm:$0xff]  ;;  %v4808_v8 = vld [vmem:[#allocation18_spill] sm:$0xff]  ;;  %s4270_s9 = scalar_lea.vmem %s4597_s5, %s3151_s24  ;;  %s4825_s16 = smov %s994_s30 }
 0x245   : >> { %1479 = vmatpush1.bf16.msra.mxu0 %v4048_v37  ;;  %1520 = vmatpush1.bf16.msra.mxu1 %v4061_v38  ;;  %v4105_v0 = vcombine.high %v4803_v20, %v4802_v17  ;;  %v4110_v1 = vcombine.low %v4801_v23, %v4800_v33  ;;  %v4116_v4 = vcombine.high %v4805_v3, %v4804_v2  ;;  %v4806_v5 = vmov 0   ;;  %v3029_v11 = vld [vmem:[%s4094_s19 + $0x8] sm:$0xff]  ;;  %v4809_v12 = vld [vmem:[#allocation21_spill] sm:$0xff]  ;;  %v4811_v15 = vld [vmem:[#allocation16_spill] sm:$0xff] }
 0x246   : >> { %1480 = vmatprep.subr.bf16.mxu0 %v4052_v25  ;;  %1521 = vmatprep.subr.bf16.mxu1 %v4065_v21  ;;  %v4124_v6 = vcombine.low %v4803_v20, %v4802_v17  ;;  %v4129_v9 = vcombine.high %v4808_v8, %v4807_v7  ;;  %v4134_v10 = vcombine.low %v4805_v3, %v4804_v2  ;;  %v4810_v13 = vld [vmem:[#allocation19_spill] sm:$0xff]  ;;  %v4812_v2 = vld [vmem:[#allocation14_spill] sm:$0xff]  ;;  %v4813_v19 = vld [vmem:[#allocation17_spill] sm:$0xff] }
 0x247   : >> { %1510 = vmatprep.mubr.bf16.mxu0 %v4627_v16  ;;  %v1590_v16 = vld [vmem:[%s4094_s19] sm:$0xff]  ;;  %1551 = vmatprep.mubr.bf16.mxu1 %v4806_v5  ;;  %v4140_v14 = vcombine.high %v4810_v13, %v4809_v12  ;;  %v4150_v3 = vcombine.high %v4812_v2, %v4811_v15  ;;  %v4155_v17 = vcombine.low %v4810_v13, %v4809_v12  ;;  %v4815_v20 = vld [vmem:[#allocation12_spill] sm:$0xff]  ;;  %v4817_v29 = vld [vmem:[#allocation13_spill] sm:$0xff] }
 0x248   : >> { %3272 = vset.pattern.permute.xlu0 %v4806_v5  ;;  %3273 = vset.pattern.permute.xlu1 %v4806_v5  ;;  %v3068_v18 = vld [vmem:[%s4094_s19 + $0x20] sm:$0xff]  ;;  %v3094_v27 = vld [vmem:[%s4094_s19 + $0x30] sm:$0xff]  ;;  %v4818_v30 = vld [vmem:[#allocation11_spill] sm:$0xff] }
 0x249   : >> { %1481 = vmatpush1.bf16.msra.mxu0 %v4071_v40  ;;  %1522 = vmatpush1.bf16.msra.mxu1 %v4082_v36  ;;  %v4816_v23 = vld [vmem:[#allocation10_spill] sm:$0xff]  ;;  %v4821_v33 = vld [vmem:[#allocation9_spill] sm:$0xff]  ;;  %v4822_v39 = vld [vmem:[#allocation7_spill] sm:$0xff] }
 0x24a   : >> { %1482 = vmatprep.subr.bf16.mxu0 %v4077_v24  ;;  %1523 = vmatprep.subr.bf16.mxu1 %v4087_v26  ;;  %v4171_v12 = vcombine.high %v4816_v23, %v4815_v20  ;;  %v4820_v31 = vld [vmem:[#allocation6_spill] sm:$0xff]  ;;  %v4202_v41 = vcombine.high %v4822_v39, %v4821_v33  ;;  %v1312_v47 = vld [vmem:[%s4257_s22 + $0x8] sm:$0xff] }
 0x24b   : >> { %1593 = vperm.xlu0 %3272, %v1590_v16   ;;  %v4145_v16 = vcombine.low %v4808_v8, %v4807_v7  ;;  %v4814_v7 = vld [vmem:[#allocation15_spill] sm:$0xff]  ;;  %v1316_v51 = vunpack.c.h.bf16 %v1312_v47  ;;  %v1315_v52 = vunpack.c.l.bf16 %v1312_v47 }
 0x24c   : >> { %v4161_v8 = vcombine.high %v4814_v7, %v4813_v19  ;;  %v4176_v13 = vcombine.low %v4814_v7, %v4813_v19  ;;  %v4197_v19 = vcombine.low %v4818_v30, %v4817_v29 }
 0x24d   : >> { %1483 = vmatpush1.bf16.msra.mxu0 %v4100_v34  ;;  %1524 = vmatpush1.bf16.msra.mxu1 %v4110_v1 }
 0x24e   : >> { %1484 = vmatprep.subr.bf16.mxu0 %v4105_v0  ;;  %1525 = vmatprep.subr.bf16.mxu1 %v4116_v4 }
 0x24f   : >> { %1731 = vperm.xlu0 %3272, %v3029_v11   ;;  %v4166_v11 = vcombine.low %v4812_v2, %v4811_v15  ;;  %v4182_v2 = vcombine.high %v4818_v30, %v4817_v29  ;;  %v4819_v15 = vld [vmem:[#allocation8_spill] sm:$0xff] }
 0x250   : >> { %v4192_v7 = vcombine.high %v4820_v31, %v4819_v15 }
 0x251   : >> { %1485 = vmatpush1.bf16.msra.mxu0 %v4124_v6  ;;  %1526 = vmatpush1.bf16.msra.mxu1 %v4134_v10 }
 0x252   : >> { %1486 = vmatprep.subr.bf16.mxu0 %v4129_v9  ;;  %1527 = vmatprep.subr.bf16.mxu1 %v4140_v14 }
 0x253   : >> { %2145 = vperm.xlu0 %3272, %v3068_v18   ;;  %v4187_v18 = vcombine.low %v4816_v23, %v4815_v20  ;;  %v4213_v20 = vcombine.low %v4822_v39, %v4821_v33  ;;  %v1317_v23 = vpack.c.bf16 %v3446_v35, %v3446_v35 }
 0x255   : >> { %1487 = vmatpush1.bf16.msra.mxu0 %v4145_v16  ;;  %1528 = vmatpush1.bf16.msra.mxu1 %v4155_v17 }
 0x256   : >> { %1488 = vmatprep.subr.bf16.mxu0 %v4150_v3  ;;  %1529 = vmatprep.subr.bf16.mxu1 %v4161_v8 }
 0x257   : >> { %2421 = vperm.xlu0 %3272, %v3094_v27   ;;  %v4207_v27 = vcombine.low %v4820_v31, %v4819_v15 }
 0x259   : >> { %1489 = vmatpush1.bf16.msra.mxu0 %v4166_v11  ;;  %1530 = vmatpush1.bf16.msra.mxu1 %v4176_v13 }
 0x25a   : >> { %1490 = vmatprep.subr.bf16.mxu0 %v4171_v12  ;;  %1531 = vmatprep.subr.bf16.mxu1 %v4182_v2 }
 0x25d   : >> { %1491 = vmatpush1.bf16.msra.mxu0 %v4187_v18  ;;  %1532 = vmatpush1.bf16.msra.mxu1 %v4197_v19 }
 0x25e   : >> { %1492 = vmatprep.subr.bf16.mxu0 %v4192_v7  ;;  %1533 = vmatprep.subr.bf16.mxu1 %v4202_v41 }
 0x261   : >> { %1493 = vmatpush1.bf16.msra.mxu0 %v4207_v27  ;;  %1534 = vmatpush1.bf16.msra.mxu1 %v4213_v20 }
 0x262   : >> { %1616 = vmatprep.subr.bf16.mxu0 %v4044_v32  ;;  %1657 = vmatprep.subr.bf16.mxu1 %v4056_v28 }
 0x264   : >> { %1511 = vmatmul.mubr.bf16.vlgmr.msra.gmra.mxu0 %v1317_v23  ;;  %1552 = vmatmul.mubr.bf16.vlgmr.msra.gmra.mxu1 %v1317_v23  ;;  %v1311_v23 = vld [vmem:[%s4257_s22] sm:$0xff] }
 0x265   : >> { %1617 = vmatpush1.bf16.msra.mxu0 %v4048_v37  ;;  %1658 = vmatpush1.bf16.msra.mxu1 %v4061_v38  ;;  %v1313_v15 = vunpack.c.l.bf16 %v1311_v23  ;;  %v1314_v29 = vunpack.c.h.bf16 %v1311_v23 }
 0x266   : >> { %1618 = vmatprep.subr.bf16.mxu0 %v4052_v25  ;;  %1659 = vmatprep.subr.bf16.mxu1 %v4065_v21 }
 0x267   : >> { %1648 = vmatprep.mubr.bf16.mxu0 %v4806_v5  ;;  %1689 = vmatprep.mubr.bf16.mxu1 %v4806_v5 }
 0x269   : >> { %1619 = vmatpush1.bf16.msra.mxu0 %v4071_v40  ;;  %1660 = vmatpush1.bf16.msra.mxu1 %v4082_v36 }
 0x26a   : >> { %1620 = vmatprep.subr.bf16.mxu0 %v4077_v24  ;;  %1661 = vmatprep.subr.bf16.mxu1 %v4087_v26 }
 0x26d   : >> { %1621 = vmatpush1.bf16.msra.mxu0 %v4100_v34  ;;  %1662 = vmatpush1.bf16.msra.mxu1 %v4110_v1 }
 0x26e   : >> { %1622 = vmatprep.subr.bf16.mxu0 %v4105_v0  ;;  %1663 = vmatprep.subr.bf16.mxu1 %v4116_v4 }
 0x271   : >> { %1623 = vmatpush1.bf16.msra.mxu0 %v4124_v6  ;;  %1664 = vmatpush1.bf16.msra.mxu1 %v4134_v10 }
 0x272   : >> { %1624 = vmatprep.subr.bf16.mxu0 %v4129_v9  ;;  %1665 = vmatprep.subr.bf16.mxu1 %v4140_v14 }
 0x275   : >> { %1625 = vmatpush1.bf16.msra.mxu0 %v4145_v16  ;;  %1666 = vmatpush1.bf16.msra.mxu1 %v4155_v17 }
 0x276   : >> { %1626 = vmatprep.subr.bf16.mxu0 %v4150_v3  ;;  %1667 = vmatprep.subr.bf16.mxu1 %v4161_v8 }
 0x279   : >> { %1627 = vmatpush1.bf16.msra.mxu0 %v4166_v11  ;;  %1668 = vmatpush1.bf16.msra.mxu1 %v4176_v13 }
 0x27a   : >> { %1628 = vmatprep.subr.bf16.mxu0 %v4171_v12  ;;  %1669 = vmatprep.subr.bf16.mxu1 %v4182_v2 }
 0x27d   : >> { %1629 = vmatpush1.bf16.msra.mxu0 %v4187_v18  ;;  %1670 = vmatpush1.bf16.msra.mxu1 %v4197_v19 }
 0x27e   : >> { %1630 = vmatprep.subr.bf16.mxu0 %v4192_v7  ;;  %1671 = vmatprep.subr.bf16.mxu1 %v4202_v41 }
 0x281   : >> { %1631 = vmatpush1.bf16.msra.mxu0 %v4207_v27  ;;  %1672 = vmatpush1.bf16.msra.mxu1 %v4213_v20 }
 0x282   : >> { %1754 = vmatprep.subr.bf16.mxu0 %v4044_v32  ;;  %1795 = vmatprep.subr.bf16.mxu1 %v4056_v28 }
 0x324   : >> { %v1512_v30 = vpop.f32.mrf.mxu0  ;;  %v1553_v33 = vpop.f32.mrf.mxu1 }
 0x325   : >> { %v1560_v31 = vadd.f32 %v1512_v30, %v1313_v15  ;;  %v1562_v54 = vadd.f32 %v1553_v33, %v1315_v52 }
 0x326   : >> { %v1514_v39 = vpop.f32.mrf.mxu0  ;;  %v1555_v44 = vpop.f32.mrf.mxu1 }
 0x327   : >> { %v3016_v42 = vmul.f32 -1.442695, %v1560_v31  ;;  %v1561_v43 = vadd.f32 %v1514_v39, %v1314_v29  ;;  %v1563_v53 = vadd.f32 %v1555_v44, %v1316_v51  ;;  %v4272_v51 = vpop.permute.xlu0 %1593 }
 0x328   : >> { %v1516_v45 = vpop.f32.mrf.mxu0  ;;  %v1557_v48 = vpop.f32.mrf.mxu1 }
 0x329   : >> { %3274 = vpow2.f32 %v3016_v42  ;;  %v3017_v46 = vmul.f32 -1.442695, %v1561_v43  ;;  %v3018_v23 = vmul.f32 -1.442695, %v1563_v53 }
 0x32a   : >> { %v1517_v49 = vpop.f32.mrf.mxu0  ;;  %v1558_v50 = vpop.f32.mrf.mxu1 }
 0x32b   : >> { %3276 = vpow2.f32 %v3017_v46 }
 0x32c   : >> { %3278 = vtanh.f32 %v1562_v54 }
 0x32d   : >> { %3280 = vpow2.f32 %v3018_v23  ;;  %v3055_v23 = vld [vmem:[%s4094_s19 + $0x18] sm:$0xff] }
 0x336   : >> { %v3275_v55 = vpop.eup %3274 }
 0x337   : >> { %v1570_v30 = vadd.f32 1.0, %v3275_v55 }
 0x338   : >> { %v3277_v15 = vpop.eup %3276 }
 0x339   : >> { %3282 = vrcp.f32 %v1570_v30  ;;  %v1571_v29 = vadd.f32 1.0, %v3277_v15  ;;  %v3279_v31 = vpop.eup %3278  ;;  %v3081_v30 = vld [vmem:[%s4094_s19 + $0x28] sm:$0xff]  ;;  %v3107_v15 = vld [vmem:[%s4094_s19 + $0x38] sm:$0xff] }
 0x33a   : >> { %v3281_v39 = vpop.eup %3280 }
 0x33b   : >> { %3284 = vrcp.f32 %v1571_v29  ;;  %v1580_v45 = vadd.f32 1.0, %v3281_v39  ;;  %v3022_v29 = vld [vmem:[%s4257_s22 + $0x10] sm:$0xff] }
 0x33c   : >> { %v1612_v39 = vunpack.c.h.bf16 %v3022_v29 }
 0x33d   : >> { %3286 = vrcp.f32 %v1580_v45 }
 0x346   : >> { %v3283_v42 = vpop.eup %3282 }
 0x347   : >> { %v1584_v47 = vmul.f32 %v3283_v42, %v3279_v31  ;;  %v1611_v31 = vunpack.c.l.bf16 %v3022_v29 }
 0x348   : >> { %v3285_v43 = vpop.eup %3284 }
 0x349   : >> { %v1583_v46 = vmul.f32 %v3442_v22, %v3285_v43 }
 0x34a   : >> { %v3287_v48 = vpop.eup %3286 }
 0x34b   : >> { %v4262_v44 = vadd.f32 %v1584_v47, %v1583_v46 }
 0x34d   : >> { %3288 = vtanh.f32 %v4262_v44 }
 0x35a   : >> { %v3289_v49 = vpop.eup %3288 }
 0x35b   : >> { %v1587_v50 = vmul.f32 %v3289_v49, %v3287_v48 }
 0x35d   : >> { %v1596_v52 = vmul.f32 %v4272_v51, %v1587_v50  ;;  %v1599_v53 = vsub.f32 %v1587_v50, %v3446_v35 }
 0x35f   : >> { %1598 = vst [vmem:[%s4270_s9] sm:$0xff] %v1596_v52  ;;  %v1600_v54 = vmul.f32 %v1599_v53, %v4272_v51 }
 0x361   : >> { %v4279_v55 = vadd.f32 %v3446_v35, %v1600_v54  ;;  %v3042_v35 = vld [vmem:[%s4094_s19 + $0x10] sm:$0xff] }
 0x362   : >> { %1869 = vperm.xlu1 %3273, %v3042_v35   ;;  %v3023_v35 = vld [vmem:[%s4257_s22 + $0x18] sm:$0xff] }
 0x363   : >> { %v1615_v33 = vpack.c.bf16 %v4279_v55, %v4279_v55 }
 0x365   : >> { %1649 = vmatmul.mubr.bf16.vlgmr.msra.gmra.mxu0 %v1615_v33  ;;  %1690 = vmatmul.mubr.bf16.vlgmr.msra.gmra.mxu1 %v1615_v33 }
 0x366   : >> { %1755 = vmatpush1.bf16.msra.mxu0 %v4048_v37  ;;  %1796 = vmatpush1.bf16.msra.mxu1 %v4061_v38 }
 0x367   : >> { %1756 = vmatprep.subr.bf16.mxu0 %v4052_v25  ;;  %1797 = vmatprep.subr.bf16.mxu1 %v4065_v21 }
 0x368   : >> { %1786 = vmatprep.mubr.bf16.mxu0 %v4806_v5  ;;  %1827 = vmatprep.mubr.bf16.mxu1 %v4806_v5 }
 0x369   : >> { %2007 = vperm.xlu1 %3273, %v3055_v23   ;;  %v1614_v23 = vunpack.c.h.bf16 %v3023_v35 }
 0x36a   : >> { %1757 = vmatpush1.bf16.msra.mxu0 %v4071_v40  ;;  %1798 = vmatpush1.bf16.msra.mxu1 %v4082_v36 }
 0x36b   : >> { %1758 = vmatprep.subr.bf16.mxu0 %v4077_v24  ;;  %1799 = vmatprep.subr.bf16.mxu1 %v4087_v26 }
 0x36d   : >> { %2283 = vperm.xlu1 %3273, %v3081_v30  }
 0x36e   : >> { %1759 = vmatpush1.bf16.msra.mxu0 %v4100_v34  ;;  %1800 = vmatpush1.bf16.msra.mxu1 %v4110_v1 }
 0x36f   : >> { %1760 = vmatprep.subr.bf16.mxu0 %v4105_v0  ;;  %1801 = vmatprep.subr.bf16.mxu1 %v4116_v4 }
 0x371   : >> { %2559 = vperm.xlu1 %3273, %v3107_v15   ;;  %v1613_v15 = vunpack.c.l.bf16 %v3023_v35 }
 0x372   : >> { %1761 = vmatpush1.bf16.msra.mxu0 %v4124_v6  ;;  %1802 = vmatpush1.bf16.msra.mxu1 %v4134_v10 }
 0x373   : >> { %1762 = vmatprep.subr.bf16.mxu0 %v4129_v9  ;;  %1803 = vmatprep.subr.bf16.mxu1 %v4140_v14 }
 0x376   : >> { %1763 = vmatpush1.bf16.msra.mxu0 %v4145_v16  ;;  %1804 = vmatpush1.bf16.msra.mxu1 %v4155_v17 }
 0x377   : >> { %1764 = vmatprep.subr.bf16.mxu0 %v4150_v3  ;;  %1805 = vmatprep.subr.bf16.mxu1 %v4161_v8 }
 0x37a   : >> { %1765 = vmatpush1.bf16.msra.mxu0 %v4166_v11  ;;  %1806 = vmatpush1.bf16.msra.mxu1 %v4176_v13 }
 0x37b   : >> { %1766 = vmatprep.subr.bf16.mxu0 %v4171_v12  ;;  %1807 = vmatprep.subr.bf16.mxu1 %v4182_v2 }
 0x37e   : >> { %1767 = vmatpush1.bf16.msra.mxu0 %v4187_v18  ;;  %1808 = vmatpush1.bf16.msra.mxu1 %v4197_v19 }
 0x37f   : >> { %1768 = vmatprep.subr.bf16.mxu0 %v4192_v7  ;;  %1809 = vmatprep.subr.bf16.mxu1 %v4202_v41 }
 0x382   : >> { %1769 = vmatpush1.bf16.msra.mxu0 %v4207_v27  ;;  %1810 = vmatpush1.bf16.msra.mxu1 %v4213_v20 }
 0x383   : >> { %1892 = vmatprep.subr.bf16.mxu0 %v4044_v32  ;;  %1933 = vmatprep.subr.bf16.mxu1 %v4056_v28 }
 0x425   : >> { %v1650_v42 = vpop.f32.mrf.mxu0  ;;  %v1691_v43 = vpop.f32.mrf.mxu1 }
 0x426   : >> { %v1698_v45 = vadd.f32 %v1650_v42, %v1611_v31  ;;  %v1700_v57 = vadd.f32 %v1691_v43, %v1613_v15 }
 0x427   : >> { %v1652_v46 = vpop.f32.mrf.mxu0  ;;  %v1693_v47 = vpop.f32.mrf.mxu1 }
 0x428   : >> { %v3024_v48 = vmul.f32 -1.442695, %v1698_v45  ;;  %v1699_v49 = vadd.f32 %v1652_v46, %v1612_v39  ;;  %v1701_v30 = vadd.f32 %v1693_v47, %v1614_v23  ;;  %v1602_v39 = vsub.f32 %v4262_v44, %v3442_v22 }
 0x429   : >> { %v1654_v50 = vpop.f32.mrf.mxu0  ;;  %v1695_v52 = vpop.f32.mrf.mxu1 }
 0x42a   : >> { %3290 = vpow2.f32 %v3024_v48  ;;  %v3025_v53 = vmul.f32 -1.442695, %v1699_v49  ;;  %v3026_v56 = vmul.f32 -1.442695, %v1701_v30  ;;  %v1603_v45 = vmul.f32 %v1602_v39, %v4272_v51 }
 0x42b   : >> { %v1655_v54 = vpop.f32.mrf.mxu0  ;;  %v1696_v33 = vpop.f32.mrf.mxu1 }
 0x42c   : >> { %3292 = vpow2.f32 %v3025_v53  ;;  %v1604_v47 = vadd.f32 %v3442_v22, %v1603_v45 }
 0x42d   : >> { %3294 = vpow2.f32 %v3026_v56 }
 0x437   : >> { %v3291_v29 = vpop.eup %3290 }
 0x438   : >> { %v1708_v58 = vadd.f32 1.0, %v3291_v29 }
 0x439   : >> { %v3293_v31 = vpop.eup %3292 }
 0x43a   : >> { %3296 = vrcp.f32 %v1708_v58  ;;  %v1709_v42 = vadd.f32 1.0, %v3293_v31  ;;  %v3295_v46 = vpop.eup %3294  ;;  %v1732_v58 = vpop.permute.xlu0 %1731 }
 0x43b   : >> { %3298 = vtanh.f32 %v1700_v57  ;;  %v1718_v43 = vadd.f32 1.0, %v3295_v46 }
 0x43c   : >> { %3300 = vrcp.f32 %v1709_v42 }
 0x43d   : >> { %3302 = vrcp.f32 %v1718_v43 }
 0x447   : >> { %v3297_v48 = vpop.eup %3296 }
 0x448   : >> { %v3299_v49 = vpop.eup %3298 }
 0x449   : >> { %v3301_v50 = vpop.eup %3300  ;;  %v1722_v52 = vmul.f32 %v3299_v49, %v3297_v48 }
 0x44a   : >> { %v1721_v53 = vmul.f32 %v3301_v50, %v1604_v47  ;;  %v3303_v44 = vpop.eup %3302 }
 0x44c   : >> { %v1723_v56 = vadd.f32 %v1722_v52, %v1721_v53 }
 0x44e   : >> { %3304 = vtanh.f32 %v1723_v56  ;;  %v1740_v57 = vsub.f32 %v1723_v56, %v1604_v47 }
 0x450   : >> { %v1741_v54 = vmul.f32 %v1740_v57, %v1732_v58 }
 0x452   : >> { %v4327_v33 = vadd.f32 %v1741_v54, %v1604_v47 }
 0x45b   : >> { %v3305_v51 = vpop.eup %3304 }
 0x45c   : >> { %v1725_v35 = vmul.f32 %v3305_v51, %v3303_v44 }
 0x45e   : >> { %v1734_v23 = vmul.f32 %v1732_v58, %v1725_v35  ;;  %v1737_v30 = vsub.f32 %v1725_v35, %v4279_v55 }
 0x460   : >> { %3032 = vst [vmem:[%s4270_s9 + $0x8] sm:$0xff] %v1734_v23  ;;  %v1738_v22 = vmul.f32 %v1737_v30, %v1732_v58  ;;  %v3036_v58 = vld [vmem:[%s4257_s22 + $0x28] sm:$0xff] }
 0x461   : >> { %v1752_v54 = vunpack.c.h.bf16 %v3036_v58  ;;  %v1751_v51 = vunpack.c.l.bf16 %v3036_v58 }
 0x462   : >> { %v4332_v15 = vadd.f32 %v1738_v22, %v4279_v55  ;;  %v3035_v55 = vld [vmem:[%s4257_s22 + $0x20] sm:$0xff] }
 0x463   : >> { %v1749_v31 = vunpack.c.l.bf16 %v3035_v55  ;;  %v1750_v42 = vunpack.c.h.bf16 %v3035_v55 }
 0x464   : >> { %v1753_v29 = vpack.c.bf16 %v4332_v15, %v4332_v15 }
 0x466   : >> { %1787 = vmatmul.mubr.bf16.vlgmr.msra.gmra.mxu0 %v1753_v29  ;;  %1828 = vmatmul.mubr.bf16.vlgmr.msra.gmra.mxu1 %v1753_v29 }
 0x467   : >> { %1893 = vmatpush1.bf16.msra.mxu0 %v4048_v37  ;;  %1934 = vmatpush1.bf16.msra.mxu1 %v4061_v38 }
 0x468   : >> { %1894 = vmatprep.subr.bf16.mxu0 %v4052_v25  ;;  %1935 = vmatprep.subr.bf16.mxu1 %v4065_v21 }
 0x469   : >> { %1924 = vmatprep.mubr.bf16.mxu0 %v4806_v5  ;;  %1965 = vmatprep.mubr.bf16.mxu1 %v4806_v5 }
 0x46b   : >> { %1895 = vmatpush1.bf16.msra.mxu0 %v4071_v40  ;;  %1936 = vmatpush1.bf16.msra.mxu1 %v4082_v36 }
 0x46c   : >> { %1896 = vmatprep.subr.bf16.mxu0 %v4077_v24  ;;  %1937 = vmatprep.subr.bf16.mxu1 %v4087_v26 }
 0x46f   : >> { %1897 = vmatpush1.bf16.msra.mxu0 %v4100_v34  ;;  %1938 = vmatpush1.bf16.msra.mxu1 %v4110_v1 }
 0x470   : >> { %1898 = vmatprep.subr.bf16.mxu0 %v4105_v0  ;;  %1939 = vmatprep.subr.bf16.mxu1 %v4116_v4 }
 0x473   : >> { %1899 = vmatpush1.bf16.msra.mxu0 %v4124_v6  ;;  %1940 = vmatpush1.bf16.msra.mxu1 %v4134_v10 }
 0x474   : >> { %1900 = vmatprep.subr.bf16.mxu0 %v4129_v9  ;;  %1941 = vmatprep.subr.bf16.mxu1 %v4140_v14 }
 0x477   : >> { %1901 = vmatpush1.bf16.msra.mxu0 %v4145_v16  ;;  %1942 = vmatpush1.bf16.msra.mxu1 %v4155_v17 }
 0x478   : >> { %1902 = vmatprep.subr.bf16.mxu0 %v4150_v3  ;;  %1943 = vmatprep.subr.bf16.mxu1 %v4161_v8 }
 0x47b   : >> { %1903 = vmatpush1.bf16.msra.mxu0 %v4166_v11  ;;  %1944 = vmatpush1.bf16.msra.mxu1 %v4176_v13 }
 0x47c   : >> { %1904 = vmatprep.subr.bf16.mxu0 %v4171_v12  ;;  %1945 = vmatprep.subr.bf16.mxu1 %v4182_v2 }
 0x47f   : >> { %1905 = vmatpush1.bf16.msra.mxu0 %v4187_v18  ;;  %1946 = vmatpush1.bf16.msra.mxu1 %v4197_v19 }
 0x480   : >> { %1906 = vmatprep.subr.bf16.mxu0 %v4192_v7  ;;  %1947 = vmatprep.subr.bf16.mxu1 %v4202_v41 }
 0x483   : >> { %1907 = vmatpush1.bf16.msra.mxu0 %v4207_v27  ;;  %1948 = vmatpush1.bf16.msra.mxu1 %v4213_v20 }
 0x484   : >> { %2030 = vmatprep.subr.bf16.mxu0 %v4044_v32  ;;  %2071 = vmatprep.subr.bf16.mxu1 %v4056_v28 }
 0x526   : >> { %v1788_v39 = vpop.f32.mrf.mxu0  ;;  %v1829_v45 = vpop.f32.mrf.mxu1 }
 0x527   : >> { %v1836_v46 = vadd.f32 %v1788_v39, %v1749_v31  ;;  %v1838_v30 = vadd.f32 %v1829_v45, %v1751_v51 }
 0x528   : >> { %v1790_v48 = vpop.f32.mrf.mxu0  ;;  %v1831_v49 = vpop.f32.mrf.mxu1 }
 0x529   : >> { %v3037_v47 = vmul.f32 -1.442695, %v1836_v46  ;;  %v1837_v50 = vadd.f32 %v1790_v48, %v1750_v42  ;;  %v1839_v44 = vadd.f32 %v1831_v49, %v1752_v54 }
 0x52a   : >> { %v1792_v43 = vpop.f32.mrf.mxu0  ;;  %v1833_v52 = vpop.f32.mrf.mxu1 }
 0x52b   : >> { %3306 = vpow2.f32 %v3037_v47  ;;  %v3038_v53 = vmul.f32 -1.442695, %v1837_v50  ;;  %v3039_v35 = vmul.f32 -1.442695, %v1839_v44  ;;  %v1870_v43 = vpop.permute.xlu1 %1869 }
 0x52c   : >> { %v1793_v56 = vpop.f32.mrf.mxu0  ;;  %v1834_v57 = vpop.f32.mrf.mxu1 }
 0x52d   : >> { %3308 = vpow2.f32 %v3038_v53 }
 0x52e   : >> { %3310 = vpow2.f32 %v3039_v35 }
 0x538   : >> { %v3307_v23 = vpop.eup %3306 }
 0x539   : >> { %v1846_v22 = vadd.f32 1.0, %v3307_v23 }
 0x53a   : >> { %v3309_v29 = vpop.eup %3308 }
 0x53b   : >> { %3312 = vrcp.f32 %v1846_v22  ;;  %v1847_v55 = vadd.f32 1.0, %v3309_v29  ;;  %v3311_v31 = vpop.eup %3310 }
 0x53c   : >> { %3314 = vtanh.f32 %v1838_v30  ;;  %v1856_v48 = vadd.f32 1.0, %v3311_v31 }
 0x53d   : >> { %3316 = vrcp.f32 %v1847_v55 }
 0x53e   : >> { %3318 = vrcp.f32 %v1856_v48 }
 0x548   : >> { %v3313_v42 = vpop.eup %3312 }
 0x549   : >> { %v3315_v39 = vpop.eup %3314 }
 0x54a   : >> { %v3317_v46 = vpop.eup %3316  ;;  %v1860_v49 = vmul.f32 %v3315_v39, %v3313_v42 }
 0x54b   : >> { %v1859_v47 = vmul.f32 %v3317_v46, %v4327_v33  ;;  %v3319_v56 = vpop.eup %3318 }
 0x54d   : >> { %v1861_v50 = vadd.f32 %v1860_v49, %v1859_v47 }
 0x54f   : >> { %3320 = vtanh.f32 %v1861_v50  ;;  %v1878_v45 = vsub.f32 %v1861_v50, %v4327_v33 }
 0x551   : >> { %v1879_v52 = vmul.f32 %v1878_v45, %v1870_v43  ;;  %v3049_v45 = vld [vmem:[%s4257_s22 + $0x38] sm:$0xff] }
 0x553   : >> { %v4375_v53 = vadd.f32 %v1879_v52, %v4327_v33  ;;  %v3048_v33 = vld [vmem:[%s4257_s22 + $0x30] sm:$0xff]  ;;  %v1890_v52 = vunpack.c.h.bf16 %v3049_v45 }
 0x554   : >> { %v1888_v30 = vunpack.c.h.bf16 %v3048_v33 }
 0x55c   : >> { %v3321_v57 = vpop.eup %3320 }
 0x55d   : >> { %v1863_v58 = vmul.f32 %v3321_v57, %v3319_v56  ;;  %v1889_v57 = vunpack.c.l.bf16 %v3049_v45 }
 0x55f   : >> { %v1872_v54 = vmul.f32 %v1870_v43, %v1863_v58  ;;  %v1875_v44 = vsub.f32 %v1863_v58, %v4332_v15 }
 0x561   : >> { %3045 = vst [vmem:[%s4270_s9 + $0x10] sm:$0xff] %v1872_v54  ;;  %v1876_v51 = vmul.f32 %v1875_v44, %v1870_v43 }
 0x563   : >> { %v4380_v35 = vadd.f32 %v1876_v51, %v4332_v15  ;;  %v1887_v15 = vunpack.c.l.bf16 %v3048_v33 }
 0x565   : >> { %v1891_v23 = vpack.c.bf16 %v4380_v35, %v4380_v35 }
 0x567   : >> { %1925 = vmatmul.mubr.bf16.vlgmr.msra.gmra.mxu0 %v1891_v23  ;;  %1966 = vmatmul.mubr.bf16.vlgmr.msra.gmra.mxu1 %v1891_v23 }
 0x568   : >> { %2031 = vmatpush1.bf16.msra.mxu0 %v4048_v37  ;;  %2072 = vmatpush1.bf16.msra.mxu1 %v4061_v38 }
 0x569   : >> { %2032 = vmatprep.subr.bf16.mxu0 %v4052_v25  ;;  %2073 = vmatprep.subr.bf16.mxu1 %v4065_v21 }
 0x56a   : >> { %2062 = vmatprep.mubr.bf16.mxu0 %v4806_v5  ;;  %2103 = vmatprep.mubr.bf16.mxu1 %v4806_v5 }
 0x56c   : >> { %2033 = vmatpush1.bf16.msra.mxu0 %v4071_v40  ;;  %2074 = vmatpush1.bf16.msra.mxu1 %v4082_v36 }
 0x56d   : >> { %2034 = vmatprep.subr.bf16.mxu0 %v4077_v24  ;;  %2075 = vmatprep.subr.bf16.mxu1 %v4087_v26 }
 0x570   : >> { %2035 = vmatpush1.bf16.msra.mxu0 %v4100_v34  ;;  %2076 = vmatpush1.bf16.msra.mxu1 %v4110_v1 }
 0x571   : >> { %2036 = vmatprep.subr.bf16.mxu0 %v4105_v0  ;;  %2077 = vmatprep.subr.bf16.mxu1 %v4116_v4 }
 0x574   : >> { %2037 = vmatpush1.bf16.msra.mxu0 %v4124_v6  ;;  %2078 = vmatpush1.bf16.msra.mxu1 %v4134_v10 }
 0x575   : >> { %2038 = vmatprep.subr.bf16.mxu0 %v4129_v9  ;;  %2079 = vmatprep.subr.bf16.mxu1 %v4140_v14 }
 0x578   : >> { %2039 = vmatpush1.bf16.msra.mxu0 %v4145_v16  ;;  %2080 = vmatpush1.bf16.msra.mxu1 %v4155_v17 }
 0x579   : >> { %2040 = vmatprep.subr.bf16.mxu0 %v4150_v3  ;;  %2081 = vmatprep.subr.bf16.mxu1 %v4161_v8 }
 0x57c   : >> { %2041 = vmatpush1.bf16.msra.mxu0 %v4166_v11  ;;  %2082 = vmatpush1.bf16.msra.mxu1 %v4176_v13 }
 0x57d   : >> { %2042 = vmatprep.subr.bf16.mxu0 %v4171_v12  ;;  %2083 = vmatprep.subr.bf16.mxu1 %v4182_v2 }
 0x580   : >> { %2043 = vmatpush1.bf16.msra.mxu0 %v4187_v18  ;;  %2084 = vmatpush1.bf16.msra.mxu1 %v4197_v19 }
 0x581   : >> { %2044 = vmatprep.subr.bf16.mxu0 %v4192_v7  ;;  %2085 = vmatprep.subr.bf16.mxu1 %v4202_v41 }
 0x584   : >> { %2045 = vmatpush1.bf16.msra.mxu0 %v4207_v27  ;;  %2086 = vmatpush1.bf16.msra.mxu1 %v4213_v20 }
 0x585   : >> { %2168 = vmatprep.subr.bf16.mxu0 %v4044_v32  ;;  %2209 = vmatprep.subr.bf16.mxu1 %v4056_v28 }
 0x627   : >> { %v1926_v22 = vpop.f32.mrf.mxu0  ;;  %v1967_v29 = vpop.f32.mrf.mxu1 }
 0x628   : >> { %v1974_v55 = vadd.f32 %v1926_v22, %v1887_v15  ;;  %v1976_v44 = vadd.f32 %v1967_v29, %v1889_v57 }
 0x629   : >> { %v1928_v31 = vpop.f32.mrf.mxu0  ;;  %v1969_v42 = vpop.f32.mrf.mxu1 }
 0x62a   : >> { %v3050_v39 = vmul.f32 -1.442695, %v1974_v55  ;;  %v1975_v46 = vadd.f32 %v1928_v31, %v1888_v30  ;;  %v1977_v56 = vadd.f32 %v1969_v42, %v1890_v52 }
 0x62b   : >> { %v1930_v48 = vpop.f32.mrf.mxu0  ;;  %v1971_v47 = vpop.f32.mrf.mxu1 }
 0x62c   : >> { %3322 = vpow2.f32 %v3050_v39  ;;  %v3051_v49 = vmul.f32 -1.442695, %v1975_v46  ;;  %v3052_v58 = vmul.f32 -1.442695, %v1977_v56  ;;  %v2008_v48 = vpop.permute.xlu1 %2007 }
 0x62d   : >> { %v1931_v50 = vpop.f32.mrf.mxu0  ;;  %v1972_v43 = vpop.f32.mrf.mxu1 }
 0x62e   : >> { %3324 = vpow2.f32 %v3051_v49 }
 0x62f   : >> { %3326 = vpow2.f32 %v3052_v58 }
 0x639   : >> { %v3323_v54 = vpop.eup %3322 }
 0x63a   : >> { %v1984_v51 = vadd.f32 1.0, %v3323_v54 }
 0x63b   : >> { %v3325_v23 = vpop.eup %3324 }
 0x63c   : >> { %3328 = vrcp.f32 %v1984_v51  ;;  %v1985_v33 = vadd.f32 1.0, %v3325_v23  ;;  %v3327_v15 = vpop.eup %3326 }
 0x63d   : >> { %3330 = vtanh.f32 %v1976_v44  ;;  %v1994_v31 = vadd.f32 1.0, %v3327_v15 }
 0x63e   : >> { %3332 = vrcp.f32 %v1985_v33 }
 0x63f   : >> { %3334 = vrcp.f32 %v1994_v31 }
 0x649   : >> { %v3329_v30 = vpop.eup %3328 }
 0x64a   : >> { %v3331_v22 = vpop.eup %3330 }
 0x64b   : >> { %v3333_v55 = vpop.eup %3332  ;;  %v1998_v39 = vmul.f32 %v3331_v22, %v3329_v30 }
 0x64c   : >> { %v1997_v42 = vmul.f32 %v3333_v55, %v4375_v53  ;;  %v3335_v50 = vpop.eup %3334 }
 0x64e   : >> { %v1999_v46 = vadd.f32 %v1998_v39, %v1997_v42 }
 0x650   : >> { %3336 = vtanh.f32 %v1999_v46  ;;  %v2016_v29 = vsub.f32 %v1999_v46, %v4375_v53 }
 0x652   : >> { %v2017_v47 = vmul.f32 %v2016_v29, %v2008_v48 }
 0x654   : >> { %v4423_v49 = vadd.f32 %v2017_v47, %v4375_v53  ;;  %v3061_v53 = vld [vmem:[%s4257_s22 + $0x40] sm:$0xff] }
 0x655   : >> { %v2026_v44 = vunpack.c.h.bf16 %v3061_v53 }
 0x65d   : >> { %v3337_v43 = vpop.eup %3336 }
 0x65e   : >> { %v2001_v45 = vmul.f32 %v3337_v43, %v3335_v50 }
 0x660   : >> { %v2010_v52 = vmul.f32 %v2008_v48, %v2001_v45  ;;  %v2013_v56 = vsub.f32 %v2001_v45, %v4380_v35 }
 0x662   : >> { %3058 = vst [vmem:[%s4270_s9 + $0x18] sm:$0xff] %v2010_v52  ;;  %v2014_v57 = vmul.f32 %v2013_v56, %v2008_v48  ;;  %v3062_v48 = vld [vmem:[%s4257_s22 + $0x48] sm:$0xff] }
 0x663   : >> { %v2028_v47 = vunpack.c.h.bf16 %v3062_v48  ;;  %v2027_v43 = vunpack.c.l.bf16 %v3062_v48 }
 0x664   : >> { %v4428_v58 = vadd.f32 %v2014_v57, %v4380_v35  ;;  %v2025_v35 = vunpack.c.l.bf16 %v3061_v53 }
 0x666   : >> { %v2029_v54 = vpack.c.bf16 %v4428_v58, %v4428_v58 }
 0x668   : >> { %2063 = vmatmul.mubr.bf16.vlgmr.msra.gmra.mxu0 %v2029_v54  ;;  %2104 = vmatmul.mubr.bf16.vlgmr.msra.gmra.mxu1 %v2029_v54 }
 0x669   : >> { %2169 = vmatpush1.bf16.msra.mxu0 %v4048_v37  ;;  %2210 = vmatpush1.bf16.msra.mxu1 %v4061_v38 }
 0x66a   : >> { %2170 = vmatprep.subr.bf16.mxu0 %v4052_v25  ;;  %2211 = vmatprep.subr.bf16.mxu1 %v4065_v21 }
 0x66b   : >> { %2200 = vmatprep.mubr.bf16.mxu0 %v4806_v5  ;;  %2241 = vmatprep.mubr.bf16.mxu1 %v4806_v5 }
 0x66d   : >> { %2171 = vmatpush1.bf16.msra.mxu0 %v4071_v40  ;;  %2212 = vmatpush1.bf16.msra.mxu1 %v4082_v36 }
 0x66e   : >> { %2172 = vmatprep.subr.bf16.mxu0 %v4077_v24  ;;  %2213 = vmatprep.subr.bf16.mxu1 %v4087_v26 }
 0x671   : >> { %2173 = vmatpush1.bf16.msra.mxu0 %v4100_v34  ;;  %2214 = vmatpush1.bf16.msra.mxu1 %v4110_v1 }
 0x672   : >> { %2174 = vmatprep.subr.bf16.mxu0 %v4105_v0  ;;  %2215 = vmatprep.subr.bf16.mxu1 %v4116_v4 }
 0x675   : >> { %2175 = vmatpush1.bf16.msra.mxu0 %v4124_v6  ;;  %2216 = vmatpush1.bf16.msra.mxu1 %v4134_v10 }
 0x676   : >> { %2176 = vmatprep.subr.bf16.mxu0 %v4129_v9  ;;  %2217 = vmatprep.subr.bf16.mxu1 %v4140_v14 }
 0x679   : >> { %2177 = vmatpush1.bf16.msra.mxu0 %v4145_v16  ;;  %2218 = vmatpush1.bf16.msra.mxu1 %v4155_v17 }
 0x67a   : >> { %2178 = vmatprep.subr.bf16.mxu0 %v4150_v3  ;;  %2219 = vmatprep.subr.bf16.mxu1 %v4161_v8 }
 0x67d   : >> { %2179 = vmatpush1.bf16.msra.mxu0 %v4166_v11  ;;  %2220 = vmatpush1.bf16.msra.mxu1 %v4176_v13 }
 0x67e   : >> { %2180 = vmatprep.subr.bf16.mxu0 %v4171_v12  ;;  %2221 = vmatprep.subr.bf16.mxu1 %v4182_v2 }
 0x681   : >> { %2181 = vmatpush1.bf16.msra.mxu0 %v4187_v18  ;;  %2222 = vmatpush1.bf16.msra.mxu1 %v4197_v19 }
 0x682   : >> { %2182 = vmatprep.subr.bf16.mxu0 %v4192_v7  ;;  %2223 = vmatprep.subr.bf16.mxu1 %v4202_v41 }
 0x685   : >> { %2183 = vmatpush1.bf16.msra.mxu0 %v4207_v27  ;;  %2224 = vmatpush1.bf16.msra.mxu1 %v4213_v20 }
 0x686   : >> { %2306 = vmatprep.subr.bf16.mxu0 %v4044_v32  ;;  %2347 = vmatprep.subr.bf16.mxu1 %v4056_v28 }
 0x728   : >> { %v2064_v51 = vpop.f32.mrf.mxu0  ;;  %v2105_v23 = vpop.f32.mrf.mxu1 }
 0x729   : >> { %v2112_v33 = vadd.f32 %v2064_v51, %v2025_v35  ;;  %v2114_v56 = vadd.f32 %v2105_v23, %v2027_v43 }
 0x72a   : >> { %v2066_v15 = vpop.f32.mrf.mxu0  ;;  %v2107_v30 = vpop.f32.mrf.mxu1 }
 0x72b   : >> { %v3063_v22 = vmul.f32 -1.442695, %v2112_v33  ;;  %v2113_v55 = vadd.f32 %v2066_v15, %v2026_v44  ;;  %v2115_v50 = vadd.f32 %v2107_v30, %v2028_v47 }
 0x72c   : >> { %v2068_v31 = vpop.f32.mrf.mxu0  ;;  %v2109_v39 = vpop.f32.mrf.mxu1 }
 0x72d   : >> { %3338 = vpow2.f32 %v3063_v22  ;;  %v3064_v42 = vmul.f32 -1.442695, %v2113_v55  ;;  %v3065_v45 = vmul.f32 -1.442695, %v2115_v50  ;;  %v2146_v31 = vpop.permute.xlu0 %2145 }
 0x72e   : >> { %v2069_v46 = vpop.f32.mrf.mxu0  ;;  %v2110_v29 = vpop.f32.mrf.mxu1 }
 0x72f   : >> { %3340 = vpow2.f32 %v3064_v42 }
 0x730   : >> { %3342 = vpow2.f32 %v3065_v45 }
 0x73a   : >> { %v3339_v52 = vpop.eup %3338 }
 0x73b   : >> { %v2122_v57 = vadd.f32 1.0, %v3339_v52 }
 0x73c   : >> { %v3341_v54 = vpop.eup %3340 }
 0x73d   : >> { %3344 = vrcp.f32 %v2122_v57  ;;  %v2123_v53 = vadd.f32 1.0, %v3341_v54  ;;  %v3343_v35 = vpop.eup %3342 }
 0x73e   : >> { %3346 = vtanh.f32 %v2114_v56  ;;  %v2132_v15 = vadd.f32 1.0, %v3343_v35 }
 0x73f   : >> { %3348 = vrcp.f32 %v2123_v53 }
 0x740   : >> { %3350 = vrcp.f32 %v2132_v15 }
 0x74a   : >> { %v3345_v44 = vpop.eup %3344 }
 0x74b   : >> { %v3347_v51 = vpop.eup %3346 }
 0x74c   : >> { %v3349_v33 = vpop.eup %3348  ;;  %v2136_v22 = vmul.f32 %v3347_v51, %v3345_v44 }
 0x74d   : >> { %v2135_v30 = vmul.f32 %v3349_v33, %v4423_v49  ;;  %v3351_v46 = vpop.eup %3350 }
 0x74f   : >> { %v2137_v55 = vadd.f32 %v2136_v22, %v2135_v30 }
 0x751   : >> { %3352 = vtanh.f32 %v2137_v55  ;;  %v2154_v23 = vsub.f32 %v2137_v55, %v4423_v49 }
 0x753   : >> { %v2155_v39 = vmul.f32 %v2154_v23, %v2146_v31 }
 0x755   : >> { %v4471_v42 = vadd.f32 %v2155_v39, %v4423_v49  ;;  %v3074_v49 = vld [vmem:[%s4257_s22 + $0x50] sm:$0xff] }
 0x756   : >> { %v2164_v56 = vunpack.c.h.bf16 %v3074_v49 }
 0x75e   : >> { %v3353_v29 = vpop.eup %3352 }
 0x75f   : >> { %v2139_v48 = vmul.f32 %v3353_v29, %v3351_v46 }
 0x761   : >> { %v2148_v47 = vmul.f32 %v2146_v31, %v2139_v48  ;;  %v2151_v50 = vsub.f32 %v2139_v48, %v4428_v58 }
 0x763   : >> { %3071 = vst [vmem:[%s4270_s9 + $0x20] sm:$0xff] %v2148_v47  ;;  %v2152_v43 = vmul.f32 %v2151_v50, %v2146_v31 }
 0x765   : >> { %v4476_v45 = vadd.f32 %v2152_v43, %v4428_v58  ;;  %v2163_v58 = vunpack.c.l.bf16 %v3074_v49 }
 0x767   : >> { %v2167_v52 = vpack.c.bf16 %v4476_v45, %v4476_v45 }
 0x769   : >> { %2201 = vmatmul.mubr.bf16.vlgmr.msra.gmra.mxu0 %v2167_v52  ;;  %2242 = vmatmul.mubr.bf16.vlgmr.msra.gmra.mxu1 %v2167_v52 }
 0x76a   : >> { %2307 = vmatpush1.bf16.msra.mxu0 %v4048_v37  ;;  %2348 = vmatpush1.bf16.msra.mxu1 %v4061_v38 }
 0x76b   : >> { %2308 = vmatprep.subr.bf16.mxu0 %v4052_v25  ;;  %2349 = vmatprep.subr.bf16.mxu1 %v4065_v21 }
 0x76c   : >> { %2338 = vmatprep.mubr.bf16.mxu0 %v4806_v5  ;;  %2379 = vmatprep.mubr.bf16.mxu1 %v4806_v5 }
 0x76e   : >> { %2309 = vmatpush1.bf16.msra.mxu0 %v4071_v40  ;;  %2350 = vmatpush1.bf16.msra.mxu1 %v4082_v36 }
 0x76f   : >> { %2310 = vmatprep.subr.bf16.mxu0 %v4077_v24  ;;  %2351 = vmatprep.subr.bf16.mxu1 %v4087_v26 }
 0x772   : >> { %2311 = vmatpush1.bf16.msra.mxu0 %v4100_v34  ;;  %2352 = vmatpush1.bf16.msra.mxu1 %v4110_v1 }
 0x773   : >> { %2312 = vmatprep.subr.bf16.mxu0 %v4105_v0  ;;  %2353 = vmatprep.subr.bf16.mxu1 %v4116_v4 }
 0x776   : >> { %2313 = vmatpush1.bf16.msra.mxu0 %v4124_v6  ;;  %2354 = vmatpush1.bf16.msra.mxu1 %v4134_v10 }
 0x777   : >> { %2314 = vmatprep.subr.bf16.mxu0 %v4129_v9  ;;  %2355 = vmatprep.subr.bf16.mxu1 %v4140_v14 }
 0x77a   : >> { %2315 = vmatpush1.bf16.msra.mxu0 %v4145_v16  ;;  %2356 = vmatpush1.bf16.msra.mxu1 %v4155_v17 }
 0x77b   : >> { %2316 = vmatprep.subr.bf16.mxu0 %v4150_v3  ;;  %2357 = vmatprep.subr.bf16.mxu1 %v4161_v8 }
 0x77e   : >> { %2317 = vmatpush1.bf16.msra.mxu0 %v4166_v11  ;;  %2358 = vmatpush1.bf16.msra.mxu1 %v4176_v13 }
 0x77f   : >> { %2318 = vmatprep.subr.bf16.mxu0 %v4171_v12  ;;  %2359 = vmatprep.subr.bf16.mxu1 %v4182_v2 }
 0x782   : >> { %2319 = vmatpush1.bf16.msra.mxu0 %v4187_v18  ;;  %2360 = vmatpush1.bf16.msra.mxu1 %v4197_v19 }
 0x783   : >> { %2320 = vmatprep.subr.bf16.mxu0 %v4192_v7  ;;  %2361 = vmatprep.subr.bf16.mxu1 %v4202_v41 }
 0x786   : >> { %2321 = vmatpush1.bf16.msra.mxu0 %v4207_v27  ;;  %2362 = vmatpush1.bf16.msra.mxu1 %v4213_v20 }
 0x787   : >> { %2444 = vmatprep.subr.bf16.mxu0 %v4044_v32  ;;  %2485 = vmatprep.subr.bf16.mxu1 %v4056_v28  ;;  %v3075_v32 = vld [vmem:[%s4257_s22 + $0x58] sm:$0xff] }
 0x788   : >> { %v2166_v28 = vunpack.c.h.bf16 %v3075_v32  ;;  %v2165_v39 = vunpack.c.l.bf16 %v3075_v32 }
 0x829   : >> { %v2202_v57 = vpop.f32.mrf.mxu0  ;;  %v2243_v54 = vpop.f32.mrf.mxu1 }
 0x82a   : >> { %v2250_v53 = vadd.f32 %v2202_v57, %v2163_v58  ;;  %v2252_v48 = vadd.f32 %v2243_v54, %v2165_v39 }
 0x82b   : >> { %v2204_v35 = vpop.f32.mrf.mxu0  ;;  %v2245_v44 = vpop.f32.mrf.mxu1 }
 0x82c   : >> { %v3076_v51 = vmul.f32 -1.442695, %v2250_v53  ;;  %v2251_v33 = vadd.f32 %v2204_v35, %v2164_v56  ;;  %v2253_v31 = vadd.f32 %v2245_v44, %v2166_v28 }
 0x82d   : >> { %v2206_v15 = vpop.f32.mrf.mxu0  ;;  %v2247_v22 = vpop.f32.mrf.mxu1 }
 0x82e   : >> { %3354 = vpow2.f32 %v3076_v51  ;;  %v3077_v30 = vmul.f32 -1.442695, %v2251_v33  ;;  %v3078_v46 = vmul.f32 -1.442695, %v2253_v31  ;;  %v2284_v51 = vpop.permute.xlu1 %2283 }
 0x82f   : >> { %v2207_v55 = vpop.f32.mrf.mxu0  ;;  %v2248_v23 = vpop.f32.mrf.mxu1 }
 0x830   : >> { %3356 = vpow2.f32 %v3077_v30 }
 0x831   : >> { %3358 = vpow2.f32 %v3078_v46 }
 0x83b   : >> { %v3355_v29 = vpop.eup %3354 }
 0x83c   : >> { %v2260_v47 = vadd.f32 1.0, %v3355_v29  ;;  %v2422_v29 = vpop.permute.xlu0 %2421 }
 0x83d   : >> { %v3357_v50 = vpop.eup %3356 }
 0x83e   : >> { %3360 = vrcp.f32 %v2260_v47  ;;  %v2261_v43 = vadd.f32 1.0, %v3357_v50  ;;  %v3359_v52 = vpop.eup %3358 }
 0x83f   : >> { %3362 = vtanh.f32 %v2252_v48  ;;  %v2270_v57 = vadd.f32 1.0, %v3359_v52 }
 0x840   : >> { %3364 = vrcp.f32 %v2261_v43 }
 0x841   : >> { %3366 = vrcp.f32 %v2270_v57 }
 0x84b   : >> { %v3361_v49 = vpop.eup %3360 }
 0x84c   : >> { %v3363_v58 = vpop.eup %3362 }
 0x84d   : >> { %v3365_v56 = vpop.eup %3364  ;;  %v2274_v53 = vmul.f32 %v3363_v58, %v3361_v49 }
 0x84e   : >> { %v2273_v35 = vmul.f32 %v3365_v56, %v4471_v42  ;;  %v3367_v22 = vpop.eup %3366 }
 0x850   : >> { %v2275_v44 = vadd.f32 %v2274_v53, %v2273_v35  ;;  %v3100_v35 = vld [vmem:[%s4257_s22 + $0x70] sm:$0xff] }
 0x852   : >> { %3368 = vtanh.f32 %v2275_v44  ;;  %v2292_v54 = vsub.f32 %v2275_v44, %v4471_v42  ;;  %v2439_v44 = vunpack.c.l.bf16 %v3100_v35 }
 0x854   : >> { %v2293_v33 = vmul.f32 %v2292_v54, %v2284_v51  ;;  %v2440_v54 = vunpack.c.h.bf16 %v3100_v35 }
 0x856   : >> { %v4519_v15 = vadd.f32 %v2293_v33, %v4471_v42 }
 0x85f   : >> { %v3369_v30 = vpop.eup %3368 }
 0x860   : >> { %v2277_v55 = vmul.f32 %v3369_v30, %v3367_v22 }
 0x862   : >> { %v2286_v23 = vmul.f32 %v2284_v51, %v2277_v55  ;;  %v2289_v32 = vsub.f32 %v2277_v55, %v4476_v45 }
 0x864   : >> { %3084 = vst [vmem:[%s4270_s9 + $0x28] sm:$0xff] %v2286_v23  ;;  %v2290_v28 = vmul.f32 %v2289_v32, %v2284_v51 }
 0x866   : >> { %v4524_v31 = vadd.f32 %v2290_v28, %v4476_v45 }
 0x868   : >> { %v2305_v39 = vpack.c.bf16 %v4524_v31, %v4524_v31 }
 0x86a   : >> { %2339 = vmatmul.mubr.bf16.vlgmr.msra.gmra.mxu0 %v2305_v39  ;;  %2380 = vmatmul.mubr.bf16.vlgmr.msra.gmra.mxu1 %v2305_v39 }
 0x86b   : >> { %2445 = vmatpush1.bf16.msra.mxu0 %v4048_v37  ;;  %2486 = vmatpush1.bf16.msra.mxu1 %v4061_v38 }
 0x86c   : >> { %2446 = vmatprep.subr.bf16.mxu0 %v4052_v25  ;;  %2487 = vmatprep.subr.bf16.mxu1 %v4065_v21 }
 0x86d   : >> { %2476 = vmatprep.mubr.bf16.mxu0 %v4806_v5  ;;  %2517 = vmatprep.mubr.bf16.mxu1 %v4806_v5 }
 0x86f   : >> { %2447 = vmatpush1.bf16.msra.mxu0 %v4071_v40  ;;  %2488 = vmatpush1.bf16.msra.mxu1 %v4082_v36 }
 0x870   : >> { %2448 = vmatprep.subr.bf16.mxu0 %v4077_v24  ;;  %2489 = vmatprep.subr.bf16.mxu1 %v4087_v26 }
 0x873   : >> { %2449 = vmatpush1.bf16.msra.mxu0 %v4100_v34  ;;  %2490 = vmatpush1.bf16.msra.mxu1 %v4110_v1 }
 0x874   : >> { %2450 = vmatprep.subr.bf16.mxu0 %v4105_v0  ;;  %2491 = vmatprep.subr.bf16.mxu1 %v4116_v4  ;;  %v3087_v0 = vld [vmem:[%s4257_s22 + $0x60] sm:$0xff] }
 0x875   : >> { %v2301_v1 = vunpack.c.l.bf16 %v3087_v0 }
 0x877   : >> { %2451 = vmatpush1.bf16.msra.mxu0 %v4124_v6  ;;  %2492 = vmatpush1.bf16.msra.mxu1 %v4134_v10 }
 0x878   : >> { %2452 = vmatprep.subr.bf16.mxu0 %v4129_v9  ;;  %2493 = vmatprep.subr.bf16.mxu1 %v4140_v14  ;;  %v3088_v14 = vld [vmem:[%s4257_s22 + $0x68] sm:$0xff] }
 0x879   : >> { %v2304_v37 = vunpack.c.h.bf16 %v3088_v14  ;;  %v2303_v38 = vunpack.c.l.bf16 %v3088_v14 }
 0x87b   : >> { %2453 = vmatpush1.bf16.msra.mxu0 %v4145_v16  ;;  %2494 = vmatpush1.bf16.msra.mxu1 %v4155_v17 }
 0x87c   : >> { %2454 = vmatprep.subr.bf16.mxu0 %v4150_v3  ;;  %2495 = vmatprep.subr.bf16.mxu1 %v4161_v8  ;;  %v2302_v3 = vunpack.c.h.bf16 %v3087_v0 }
 0x87f   : >> { %2455 = vmatpush1.bf16.msra.mxu0 %v4166_v11  ;;  %2496 = vmatpush1.bf16.msra.mxu1 %v4176_v13 }
 0x880   : >> { %2456 = vmatprep.subr.bf16.mxu0 %v4171_v12  ;;  %2497 = vmatprep.subr.bf16.mxu1 %v4182_v2 }
 0x883   : >> { %2457 = vmatpush1.bf16.msra.mxu0 %v4187_v18  ;;  %2498 = vmatpush1.bf16.msra.mxu1 %v4197_v19 }
 0x884   : >> { %2458 = vmatprep.subr.bf16.mxu0 %v4192_v7  ;;  %2499 = vmatprep.subr.bf16.mxu1 %v4202_v41 }
 0x887   : >> { %2459 = vmatpush1.bf16.msra.mxu0 %v4207_v27  ;;  %2500 = vmatpush1.bf16.msra.mxu1 %v4213_v20 }
 0x92a   : >> { %v2340_v4 = vpop.f32.mrf.mxu0  ;;  %v2381_v5 = vpop.f32.mrf.mxu1 }
 0x92b   : >> { %v2388_v6 = vadd.f32 %v2340_v4, %v2301_v1  ;;  %v2390_v24 = vadd.f32 %v2381_v5, %v2303_v38  ;;  %v3101_v1 = vld [vmem:[%s4257_s22 + $0x78] sm:$0xff] }
 0x92c   : >> { %v2342_v2 = vpop.f32.mrf.mxu0  ;;  %v2383_v8 = vpop.f32.mrf.mxu1  ;;  %v2441_v5 = vunpack.c.l.bf16 %v3101_v1 }
 0x92d   : >> { %v3089_v9 = vmul.f32 -1.442695, %v2388_v6  ;;  %v2389_v10 = vadd.f32 %v2342_v2, %v2302_v3  ;;  %v2391_v25 = vadd.f32 %v2383_v8, %v2304_v37  ;;  %v2442_v3 = vunpack.c.h.bf16 %v3101_v1 }
 0x92e   : >> { %v2344_v19 = vpop.f32.mrf.mxu0  ;;  %v2385_v12 = vpop.f32.mrf.mxu1 }
 0x92f   : >> { %3370 = vpow2.f32 %v3089_v9  ;;  %v3090_v7 = vmul.f32 -1.442695, %v2389_v10  ;;  %v3091_v21 = vmul.f32 -1.442695, %v2391_v25 }
 0x930   : >> { %v2345_v41 = vpop.f32.mrf.mxu0  ;;  %v2386_v13 = vpop.f32.mrf.mxu1 }
 0x931   : >> { %3372 = vpow2.f32 %v3090_v7 }
 0x932   : >> { %3374 = vpow2.f32 %v3091_v21 }
 0x93c   : >> { %v3371_v40 = vpop.eup %3370 }
 0x93d   : >> { %v2398_v36 = vadd.f32 1.0, %v3371_v40  ;;  %v2560_v40 = vpop.permute.xlu1 %2559 }
 0x93e   : >> { %v3373_v26 = vpop.eup %3372 }
 0x93f   : >> { %3376 = vrcp.f32 %v2398_v36  ;;  %v2399_v34 = vadd.f32 1.0, %v3373_v26  ;;  %v3375_v17 = vpop.eup %3374 }
 0x940   : >> { %3378 = vtanh.f32 %v2390_v24  ;;  %v2408_v18 = vadd.f32 1.0, %v3375_v17 }
 0x941   : >> { %3380 = vrcp.f32 %v2399_v34 }
 0x942   : >> { %3382 = vrcp.f32 %v2408_v18 }
 0x94c   : >> { %v3377_v20 = vpop.eup %3376 }
 0x94d   : >> { %v3379_v16 = vpop.eup %3378 }
 0x94e   : >> { %v3381_v11 = vpop.eup %3380  ;;  %v2412_v27 = vmul.f32 %v3379_v16, %v3377_v20 }
 0x94f   : >> { %v2411_v42 = vmul.f32 %v3381_v11, %v4519_v15  ;;  %v3383_v50 = vpop.eup %3382 }
 0x951   : >> { %v2413_v45 = vadd.f32 %v2412_v27, %v2411_v42 }
 0x953   : >> { %3384 = vtanh.f32 %v2413_v45  ;;  %v2430_v46 = vsub.f32 %v2413_v45, %v4519_v15 }
 0x955   : >> { %v2431_v48 = vmul.f32 %v2430_v46, %v2422_v29 }
 0x957   : >> { %v2432_v47 = vadd.f32 %v2431_v48, %v4519_v15 }
 0x960   : >> { %v3385_v43 = vpop.eup %3384 }
 0x961   : >> { %v2415_v52 = vmul.f32 %v3385_v43, %v3383_v50 }
 0x963   : >> { %v2424_v49 = vmul.f32 %v2422_v29, %v2415_v52  ;;  %v2427_v58 = vsub.f32 %v2415_v52, %v4524_v31 }
 0x965   : >> { %3097 = vst [vmem:[%s4270_s9 + $0x30] sm:$0xff] %v2424_v49  ;;  %v2428_v56 = vmul.f32 %v2427_v58, %v2422_v29 }
 0x967   : >> { %v2429_v57 = vadd.f32 %v2428_v56, %v4524_v31 }
 0x969   : >> { %v2443_v53 = vpack.c.bf16 %v2429_v57, %v2429_v57 }
 0x96b   : >> { %2477 = vmatmul.mubr.bf16.vlgmr.msra.gmra.mxu0 %v2443_v53  ;;  %2518 = vmatmul.mubr.bf16.vlgmr.msra.gmra.mxu1 %v2443_v53 }
 0xa2b   : >> { %v2478_v51 = vpop.f32.mrf.mxu0  ;;  %v2519_v33 = vpop.f32.mrf.mxu1 }
 0xa2c   : >> { %v2526_v15 = vadd.f32 %v2478_v51, %v2439_v44  ;;  %v2528_v8 = vadd.f32 %v2519_v33, %v2441_v5 }
 0xa2d   : >> { %v2480_v22 = vpop.f32.mrf.mxu0  ;;  %v2521_v30 = vpop.f32.mrf.mxu1 }
 0xa2e   : >> { %v3102_v55 = vmul.f32 -1.442695, %v2526_v15  ;;  %v2527_v23 = vadd.f32 %v2480_v22, %v2440_v54  ;;  %v2529_v4 = vadd.f32 %v2521_v30, %v2442_v3 }
 0xa2f   : >> { %v2482_v32 = vpop.f32.mrf.mxu0  ;;  %v2523_v28 = vpop.f32.mrf.mxu1 }
 0xa30   : >> { %3386 = vpow2.f32 %v3102_v55  ;;  %v3103_v39 = vmul.f32 -1.442695, %v2527_v23  ;;  %v3104_v6 = vmul.f32 -1.442695, %v2529_v4 }
 0xa31   : >> { %v2483_v0 = vpop.f32.mrf.mxu0  ;;  %v2524_v31 = vpop.f32.mrf.mxu1 }
 0xa32   : >> { %3388 = vpow2.f32 %v3103_v39 }
 0xa33   : >> { %3390 = vpow2.f32 %v3104_v6 }
 0xa3d   : >> { %v3387_v2 = vpop.eup %3386 }
 0xa3e   : >> { %v2536_v9 = vadd.f32 1.0, %v3387_v2 }
 0xa3f   : >> { %v3389_v10 = vpop.eup %3388 }
 0xa40   : >> { %3392 = vrcp.f32 %v2536_v9  ;;  %v2537_v19 = vadd.f32 1.0, %v3389_v10  ;;  %v3391_v12 = vpop.eup %3390 }
 0xa41   : >> { %3394 = vtanh.f32 %v2528_v8  ;;  %v2546_v14 = vadd.f32 1.0, %v3391_v12 }
 0xa42   : >> { %3396 = vrcp.f32 %v2537_v19 }
 0xa43   : >> { %3398 = vrcp.f32 %v2546_v14 }
 0xa4d   : >> { %v3393_v7 = vpop.eup %3392 }
 0xa4e   : >> { %v3395_v41 = vpop.eup %3394 }
 0xa4f   : >> { %v3397_v13 = vpop.eup %3396  ;;  %v2550_v37 = vmul.f32 %v3395_v41, %v3393_v7 }
 0xa50   : >> { %v2549_v25 = vmul.f32 %v3397_v13, %v2432_v47  ;;  %v3399_v26 = vpop.eup %3398 }
 0xa52   : >> { %v2551_v38 = vadd.f32 %v2550_v37, %v2549_v25 }
 0xa54   : >> { %3400 = vtanh.f32 %v2551_v38  ;;  %v2568_v21 = vsub.f32 %v2551_v38, %v2432_v47 }
 0xa56   : >> { %v2569_v24 = vmul.f32 %v2568_v21, %v2560_v40 }
 0xa58   : >> { %v2570_v36 = vadd.f32 %v2569_v24, %v2432_v47  }
 0xa5a   : >> { %v4823_v22 = vmov %v2570_v36  ;;  %2572 = vst [vmem:[%s3536_s23] sm:$0xff] (%p3949_p6), %v2570_v36 }
 0xa61   : >> { %v3401_v34 = vpop.eup %3400 }
 0xa62   : >> { %v2553_v17 = vmul.f32 %v3401_v34, %v3399_v26 }
 0xa64   : >> { %v2562_v20 = vmul.f32 %v2560_v40, %v2553_v17  ;;  %v2565_v16 = vsub.f32 %v2553_v17, %v2429_v57 }
 0xa66   : >> { %3110 = vst [vmem:[%s4270_s9 + $0x38] sm:$0xff] %v2562_v20  ;;  %v2566_v11 = vmul.f32 %v2565_v16, %v2560_v40  ;;  %990 = sbr.rel (!%p3949_p6) target bundleno = 309 (0x135), region = 183 }
 0xa68   : >> { %v2567_v18 = vadd.f32 %v2566_v11, %v2429_v57  }
 0xa6a   : >> { %v4824_v35 = vmov %v2567_v18  ;;  %2571 = vst [vmem:[%s3531_s20] sm:$0xff] (%p3949_p6), %v2567_v18 }
 0xa6b PF: > { %s18_s26 = sadd.s32 1, %s3438_s26   ;;  %s4826_s24 = smov %s3434_s25 }
 0xa6c   : > { %p15_p7 = scmp.ge.s32.totalorder %s18_s26, 4   ;;  %s4827_s25 = smov %s4829_s27 }
 0xa6e   :  { %17 = sbr.rel (!%p15_p7) target bundleno = 2 (0x2), region = 194 }
 0xa73   :  { %2632 = vsyncmov [#allocation3] }
 0xa76   :  { %s2633_s16 = vpop.sfrf %2632 }
 0xa77   :  { %p3114_p8 = scmp.ne.s32.totalorder %s2633_s16, 0 }
 0xa79   :  { %2637 = shalt.err (%p3114_p8)  }

</bundles_post_ra>
